<compile_context>
chip_gen: v5e
topology: v5e:2x2
jax: 0.10.0
libtpu: 0.0.40
codegen_flags: <defaults>
</compile_context>

<pallas_src>
import math

import jax
import jax.numpy as jnp
from jax.experimental import pallas as pl
from jax.experimental.pallas import tpu as pltpu

# ---- model configuration (TransformerModel(feature_size=32, num_layers=1, col_num=1)) ----
FEATURE_SIZE = 32            # d_model
NUM_HEADS = 8                # nn.TransformerEncoderLayer(nhead=8)
HEAD_DIM = FEATURE_SIZE // NUM_HEADS
DIM_FF = 2048                # default dim_feedforward
COL_NUM = 1
LN_EPS = 1e-5
SEQ_LEN = 8
BATCH = 2

TOKENS = SEQ_LEN * BATCH     # folded (S*N) token axis, processed in one step
HT = NUM_HEADS * TOKENS      # 128 lane-packed score columns
OUT_PAD = 128                # lane-dense padded decoder output width
NEG_INF = -1e30              # finite mask value (robust vs -inf)

# ---- row layout of the width-32 small-parameter slab (one DMA) ----
S_ROW_PE = 0                                 # rows [0,16): positional encoding (folded)
S_ROW_BO = TOKENS                            # 16
S_ROW_LN1W = TOKENS + 1
S_ROW_LN1B = TOKENS + 2
S_ROW_B2 = TOKENS + 3
S_ROW_LN2W = TOKENS + 4
S_ROW_LN2B = TOKENS + 5
S_ROW_WO = 24                                # 8-aligned -> clean sublane slice for the matmul RHS
S_ROW_SEL = S_ROW_WO + FEATURE_SIZE          # 56, 8-aligned; rows [56,184): head selector (128,32)
SMALL_ROWS = S_ROW_SEL + HT                  # 184

# ---- row layout of the width-128 slab (one DMA) ----
W_ROW_MASK = 0                               # rows [0,16): block-causal mask pre-tiled to (16,128)
W_ROW_DECW = TOKENS                          # rows [16,48): decoder weight padded to 128 lanes
W_ROW_DECB = W_ROW_DECW + FEATURE_SIZE       # 48: decoder bias (padded)
W_ROW_WQKV = 56                              # rows [56,88): [Wq^T*scale | Wk^T | Wv^T | 0]
W_ROW_BQKV = W_ROW_WQKV + FEATURE_SIZE       # 88: [bq*scale | bk | bv | 0]
WIDE_ROWS = W_ROW_BQKV + 1                   # 89


# ----------------------------- Pallas kernel ---------------------------------
def _layer_norm(x, w, b):
    mu = jnp.mean(x, axis=-1, keepdims=True)
    var = jnp.mean(jnp.square(x - mu), axis=-1, keepdims=True)
    return (x - mu) * jax.lax.rsqrt(var + LN_EPS) * w + b


def transformer_kernel(x_ref, small_ref, wide_ref, w1b1_hbm, w2_hbm, o_ref,
                       w1b1_vmem, w2_vmem, dma_sem):
    """Whole (S*N=16, E=32) batch in one step: encoder layer + linear decoder."""
    f32 = jnp.float32
    bf16 = jnp.bfloat16
    E, T = FEATURE_SIZE, TOKENS

    # --- kick off the FF-weight DMAs immediately; they hide behind attention ---
    cp_w1 = pltpu.make_async_copy(w1b1_hbm, w1b1_vmem, dma_sem.at[0])
    cp_w2 = pltpu.make_async_copy(w2_hbm, w2_vmem, dma_sem.at[1])
    cp_w1.start()
    cp_w2.start()

    def srow(r):                                   # one (1, E) row of the small slab
        return small_ref[pl.ds(r, 1), :]

    # positional encoding add (pe pre-expanded to the folded token axis)
    x = x_ref[...] + small_ref[pl.ds(S_ROW_PE, T), :]                 # (16,32) f32

    # --- fused Q/K/V projection: one (16,32)@(32,128) push + one bias row ---
    # (1/sqrt(head_dim) is pre-folded into Wq/bq; lanes 96:128 of the RHS are 0)
    proj = jnp.dot(x, wide_ref[pl.ds(W_ROW_WQKV, E), :],
                   preferred_element_type=f32) + wide_ref[pl.ds(W_ROW_BQKV, 1), :]
    q = proj[:, 0:E]                                                  # (16,32) scaled
    k = proj[:, E:2 * E]
    v = proj[:, 2 * E:3 * E]

    # --- lane-packed multi-head attention ---
    # sel[h*T+j, e] = 1 iff feature e belongs to head h (also used as the per-head
    # summing matrix for the softmax denominators).
    sel = small_ref[pl.ds(S_ROW_SEL, HT), :]                          # (128,32) 0/1
    k_big = jnp.concatenate([k] * NUM_HEADS, axis=0) * sel            # (128,32)
    v_big = jnp.concatenate([v] * NUM_HEADS, axis=0) * sel            # (128,32)

    # all heads' scores in one lane-dense (16,128) tile
    s = jax.lax.dot_general(q, k_big, (((1,), (1,)), ((), ())),
                            preferred_element_type=f32)
    s = s + wide_ref[pl.ds(W_ROW_MASK, T), :]                         # block-causal mask
    m = jnp.max(s, axis=-1, keepdims=True)                            # row-global max (valid stabilizer)
    p = jnp.exp(s - m)                                                # masked entries -> exp(-1e30)=0

    ctx = jnp.dot(p, v_big, preferred_element_type=f32)               # (16,32) unnormalized per-head ctx
    denom = jnp.dot(p, sel, preferred_element_type=f32)               # (16,32) per-head softmax sums
    ctx = ctx * pl.reciprocal(denom, approx=True)                     # divide on the EUP slot

    attn = jnp.dot(ctx, small_ref[pl.ds(S_ROW_WO, E), :],
                   preferred_element_type=f32) + srow(S_ROW_BO)

    # --- residual + LayerNorm1 (f32) ---
    x = _layer_norm(x + attn, srow(S_ROW_LN1W), srow(S_ROW_LN1B))

    # --- feed-forward: bf16 weights/activations on the MXU, f32 accumulation ---
    cp_w1.wait()
    cp_w2.wait()
    h = jnp.dot(x.astype(bf16), w1b1_vmem[pl.ds(0, E), :],
                preferred_element_type=f32)
    h = jnp.maximum(h + w1b1_vmem[pl.ds(E, 1), :].astype(f32), 0.0)
    ff = jnp.dot(h.astype(bf16), w2_vmem[...],
                 preferred_element_type=f32) + srow(S_ROW_B2)

    # --- residual + LayerNorm2 (f32) ---
    x = _layer_norm(x + ff, srow(S_ROW_LN2W), srow(S_ROW_LN2B))

    # --- decoder linear, written as a lane-dense 128-wide padded block ---
    out = jnp.dot(x, wide_ref[pl.ds(W_ROW_DECW, E), :],
                  preferred_element_type=f32) + wide_ref[pl.ds(W_ROW_DECB, 1), :]
    o_ref[...] = out


# ------------------------------ glue / wrapper --------------------------------
def positional_encoding(seq_len, d_model):
    pos = jnp.arange(seq_len, dtype=jnp.float32)[:, None]
    div = jnp.exp(jnp.arange(0, d_model, 2, dtype=jnp.float32)
                  * (-math.log(10000.0) / d_model))
    pe = jnp.zeros((seq_len, d_model), jnp.float32)
    pe = pe.at[:, 0::2].set(jnp.sin(pos * div))
    pe = pe.at[:, 1::2].set(jnp.cos(pos * div))
    return pe


def init_params(key):
    """Deterministic synthetic parameters (torch Linear layout: weight = (out, in)).
    FF weights are pre-rounded through bf16 so kernel and reference see the same values."""
    E, F, C = FEATURE_SIZE, DIM_FF, COL_NUM
    ks = jax.random.split(key, 12)
    u = lambda k, shape, r: jax.random.uniform(k, shape, jnp.float32, -r, r)
    q16 = lambda a: a.astype(jnp.bfloat16).astype(jnp.float32)
    return dict(
        wq=u(ks[0], (E, E), 0.1), bq=u(ks[1], (E,), 0.1),
        wk=u(ks[2], (E, E), 0.1), bk=u(ks[3], (E,), 0.1),
        wv=u(ks[4], (E, E), 0.1), bv=u(ks[5], (E,), 0.1),
        wo=u(ks[6], (E, E), 0.1), bo=jnp.zeros((E,), jnp.float32),
        ln1_w=jnp.ones((E,), jnp.float32), ln1_b=jnp.zeros((E,), jnp.float32),
        w1=q16(u(ks[7], (F, E), 0.05)), b1=q16(u(ks[8], (F,), 0.05)),
        w2=q16(u(ks[9], (E, F), 0.05)), b2=u(ks[10], (E,), 0.05),
        ln2_w=jnp.ones((E,), jnp.float32), ln2_b=jnp.zeros((E,), jnp.float32),
        dec_w=u(ks[11], (C, E), 0.1), dec_b=jnp.zeros((C,), jnp.float32),
    )


def pack_params(params):
    """All repacking done ONCE here (hoisted out of the per-call path)."""
    E, T, H, Dh = FEATURE_SIZE, TOKENS, NUM_HEADS, HEAD_DIM
    scale = 1.0 / math.sqrt(Dh)

    # positional encoding expanded to the folded token axis (row = s*BATCH + n)
    pe_full = jnp.repeat(positional_encoding(SEQ_LEN, E), BATCH, axis=0)      # (16,32)

    # block-causal mask on the folded token axis, pre-tiled to all 8 head blocks
    idx = jnp.arange(T)
    s_idx, n_idx = idx // BATCH, idx % BATCH
    allowed = (n_idx[:, None] == n_idx[None, :]) & (s_idx[None, :] <= s_idx[:, None])
    mask16 = jnp.where(allowed, 0.0, NEG_INF).astype(jnp.float32)             # (16,16)
    mask_big = jnp.tile(mask16, (1, H))                                       # (16,128)

    # head selector: sel[h*T+j, e] = 1 iff e belongs to head h
    sel = ((jnp.arange(H * T)[:, None] // T) ==
           (jnp.arange(E)[None, :] // Dh)).astype(jnp.float32)                # (128,32)

    # --- width-32 slab ---
    small = jnp.zeros((SMALL_ROWS, E), jnp.float32)
    small = small.at[S_ROW_PE:S_ROW_PE + T].set(pe_full)
    small = small.at[S_ROW_BO].set(params['bo'])
    small = small.at[S_ROW_LN1W].set(params['ln1_w'])
    small = small.at[S_ROW_LN1B].set(params['ln1_b'])
    small = small.at[S_ROW_B2].set(params['b2'])
    small = small.at[S_ROW_LN2W].set(params['ln2_w'])
    small = small.at[S_ROW_LN2B].set(params['ln2_b'])
    small = small.at[S_ROW_WO:S_ROW_WO + E].set(params['wo'].T)
    small = small.at[S_ROW_SEL:S_ROW_SEL + H * T].set(sel)
    assert small.shape == (SMALL_ROWS, E)

    # --- width-128 slab ---
    wide = jnp.zeros((WIDE_ROWS, OUT_PAD), jnp.float32)
    wide = wide.at[W_ROW_MASK:W_ROW_MASK + T].set(mask_big)
    wide = wide.at[W_ROW_DECW:W_ROW_DECW + E, :COL_NUM].set(params['dec_w'].T)
    wide = wide.at[W_ROW_DECB, :COL_NUM].set(params['dec_b'])
    qkv_w = jnp.concatenate([params['wq'].T * scale, params['wk'].T, params['wv'].T],
                            axis=1)                                            # (32,96)
    wide = wide.at[W_ROW_WQKV:W_ROW_WQKV + E, :3 * E].set(qkv_w)
    qkv_b = jnp.concatenate([params['bq'] * scale, params['bk'], params['bv']])  # (96,)
    wide = wide.at[W_ROW_BQKV, :3 * E].set(qkv_b)
    assert wide.shape == (WIDE_ROWS, OUT_PAD)

    # --- feed-forward weights in bf16 (dominant HBM payload, DMA'd manually) ---
    w1b1 = jnp.concatenate([params['w1'].T, params['b1'][None, :]],
                           axis=0).astype(jnp.bfloat16)                        # (33,2048)
    w2 = params['w2'].T.astype(jnp.bfloat16)                                   # (2048,32)

    return dict(small32=small, wide128=wide, w1b1=w1b1, w2=w2)


@jax.jit
def transformer_forward(packed, src):
    """src: (S, N, E) float32  ->  (S, N, COL_NUM) float32"""
    S, N, E = src.shape
    T = S * N
    x2d = src.reshape(T, E)          # fold batch into rows (free reshape, row = s*N+n)

    out_pad = pl.pallas_call(
        transformer_kernel,
        out_shape=jax.ShapeDtypeStruct((T, OUT_PAD), jnp.float32),
        in_specs=[
            pl.BlockSpec(memory_space=pltpu.MemorySpace.VMEM),   # x2d
            pl.BlockSpec(memory_space=pltpu.MemorySpace.VMEM),   # small32 slab
            pl.BlockSpec(memory_space=pltpu.MemorySpace.VMEM),   # wide128 slab
            pl.BlockSpec(memory_space=pl.ANY),                   # w1b1 (manual DMA)
            pl.BlockSpec(memory_space=pl.ANY),                   # w2   (manual DMA)
        ],
        out_specs=pl.BlockSpec(memory_space=pltpu.MemorySpace.VMEM),
        scratch_shapes=[
            pltpu.VMEM((FEATURE_SIZE + 1, DIM_FF), jnp.bfloat16),  # w1+b1 landing buffer
            pltpu.VMEM((DIM_FF, FEATURE_SIZE), jnp.bfloat16),      # w2 landing buffer
            pltpu.SemaphoreType.DMA((2,)),
        ],
    )(x2d, packed['small32'], packed['wide128'], packed['w1b1'], packed['w2'])

    return out_pad[:, :COL_NUM].reshape(S, N, COL_NUM)


# --------------------------- pure-JAX reference --------------------------------
def _ln_ref(x, w, b):
    mu = jnp.mean(x, axis=-1, keepdims=True)
    var = jnp.mean(jnp.square(x - mu), axis=-1, keepdims=True)
    return (x - mu) * jax.lax.rsqrt(var + LN_EPS) * w + b


def causal_mask(n):
    i = jnp.arange(n)[:, None]
    j = jnp.arange(n)[None, :]
    return jnp.where(j <= i, 0.0, -jnp.inf).astype(jnp.float32)


def reference_forward(params, src):
    E, H, Dh = FEATURE_SIZE, NUM_HEADS, HEAD_DIM
    S, N, _ = src.shape
    pe = positional_encoding(S, E)
    mask = causal_mask(S)
    x = src + pe[:, None, :]
    q = x @ params['wq'].T + params['bq']
    k = x @ params['wk'].T + params['bk']
    v = x @ params['wv'].T + params['bv']
    qh = q.reshape(S, N, H, Dh)
    kh = k.reshape(S, N, H, Dh)
    vh = v.reshape(S, N, H, Dh)
    scores = jnp.einsum('inhd,jnhd->nhij', qh / math.sqrt(Dh), kh) + mask
    p = jax.nn.softmax(scores, axis=-1)
    attn = jnp.einsum('nhij,jnhd->inhd', p, vh).reshape(S, N, E)
    attn = attn @ params['wo'].T + params['bo']
    x = _ln_ref(x + attn, params['ln1_w'], params['ln1_b'])
    ff = jax.nn.relu(x @ params['w1'].T + params['b1'])
    ff = ff @ params['w2'].T + params['b2']
    x = _ln_ref(x + ff, params['ln2_w'], params['ln2_b'])
    return x @ params['dec_w'].T + params['dec_b']


# ------------------------------------ main -------------------------------------
if __name__ == "__main__":
    key = jax.random.PRNGKey(0)
    pkey, xkey = jax.random.split(key)
    params = init_params(pkey)
    # pre-pack once (outside the jitted per-call path) — review item 5
    packed = jax.tree_util.tree_map(jax.block_until_ready, pack_params(params))
    src = jax.random.normal(xkey, (SEQ_LEN, BATCH, FEATURE_SIZE), jnp.float32)

    out = jax.block_until_ready(transformer_forward(packed, src))
    ref = reference_forward(params, src)

    assert out.shape == (SEQ_LEN, BATCH, COL_NUM), out.shape
    max_err = float(jnp.max(jnp.abs(out - ref)))
    # tolerance accounts for bf16 MXU inputs on the feed-forward path
    assert jnp.allclose(out, ref, atol=5e-3, rtol=5e-3), max_err
    print("KERNEL_OK")
</pallas_src>

<mosaic_0001>
module attributes {stable_mosaic.version = 11 : i64} {
  func.func @transformer_kernel(%arg0: memref<16x32xf32, #tpu.memory_space<vmem>>, %arg1: memref<184x32xf32, #tpu.memory_space<vmem>>, %arg2: memref<89x128xf32, #tpu.memory_space<vmem>>, %arg3: memref<33x2048xbf16, #tpu.memory_space<any>>, %arg4: memref<2048x32xbf16, #tpu.memory_space<any>>, %arg5: memref<16x128xf32, #tpu.memory_space<vmem>>, %arg6: memref<33x2048xbf16, #tpu.memory_space<vmem>>, %arg7: memref<2048x32xbf16, #tpu.memory_space<vmem>>, %arg8: memref<2x!tpu.dma_semaphore, #tpu.memory_space<semaphore_mem>>) attributes {dimension_semantics = [], scalar_prefetch = 0 : i64, scratch_operands = 3 : i64, tpu.core_type = #tpu.core_type<tc>} {
    %c0_i32 = arith.constant 0 : i32
    %0 = tpu.memref_slice %arg8[%c0_i32] : memref<2x!tpu.dma_semaphore, #tpu.memory_space<semaphore_mem>> -> memref<1x!tpu.dma_semaphore, #tpu.memory_space<semaphore_mem>>
    %1 = tpu.memref_squeeze %0 : memref<1x!tpu.dma_semaphore, #tpu.memory_space<semaphore_mem>> -> memref<!tpu.dma_semaphore, #tpu.memory_space<semaphore_mem>>
    tpu.enqueue_dma source(%arg3 : memref<33x2048xbf16, #tpu.memory_space<any>>) target(%arg6 : memref<33x2048xbf16, #tpu.memory_space<vmem>>) target_semaphore(%1 : memref<!tpu.dma_semaphore, #tpu.memory_space<semaphore_mem>>)
    %c1_i32 = arith.constant 1 : i32
    %2 = tpu.memref_slice %arg8[%c1_i32] : memref<2x!tpu.dma_semaphore, #tpu.memory_space<semaphore_mem>> -> memref<1x!tpu.dma_semaphore, #tpu.memory_space<semaphore_mem>>
    %3 = tpu.memref_squeeze %2 : memref<1x!tpu.dma_semaphore, #tpu.memory_space<semaphore_mem>> -> memref<!tpu.dma_semaphore, #tpu.memory_space<semaphore_mem>>
    tpu.enqueue_dma source(%arg4 : memref<2048x32xbf16, #tpu.memory_space<any>>) target(%arg7 : memref<2048x32xbf16, #tpu.memory_space<vmem>>) target_semaphore(%3 : memref<!tpu.dma_semaphore, #tpu.memory_space<semaphore_mem>>)
    %c0 = arith.constant 0 : index
    %c0_0 = arith.constant 0 : index
    %4 = vector.load %arg0[%c0, %c0_0] : memref<16x32xf32, #tpu.memory_space<vmem>>, vector<16x32xf32>
    %c0_1 = arith.constant 0 : index
    %c0_2 = arith.constant 0 : index
    %5 = vector.load %arg1[%c0_1, %c0_2] : memref<184x32xf32, #tpu.memory_space<vmem>>, vector<16x32xf32>
    %6 = arith.addf %4, %5 : vector<16x32xf32>
    %c56 = arith.constant 56 : index
    %c0_3 = arith.constant 0 : index
    %7 = vector.load %arg2[%c56, %c0_3] : memref<89x128xf32, #tpu.memory_space<vmem>>, vector<32x128xf32>
    %cst = arith.constant dense<0.000000e+00> : vector<16x128xf32>
    %8 = tpu.matmul %6, %7, %cst {dimension_numbers = #tpu.dot_dimension_numbers<[1], [0], [0], [1], [0, 0, 1, 1], [], []>} : vector<16x32xf32>, vector<32x128xf32>, vector<16x128xf32> -> vector<16x128xf32>
    %c88 = arith.constant 88 : index
    %c0_4 = arith.constant 0 : index
    %9 = vector.load %arg2[%c88, %c0_4] : memref<89x128xf32, #tpu.memory_space<vmem>>, vector<1x128xf32>
    %10 = vector.broadcast %9 : vector<1x128xf32> to vector<16x128xf32>
    %11 = arith.addf %8, %10 : vector<16x128xf32>
    %12 = vector.extract_strided_slice %11 {offsets = [0, 0], sizes = [16, 32], strides = [1, 1]} : vector<16x128xf32> to vector<16x32xf32>
    %13 = vector.extract_strided_slice %11 {offsets = [0, 32], sizes = [16, 32], strides = [1, 1]} : vector<16x128xf32> to vector<16x32xf32>
    %14 = vector.extract_strided_slice %11 {offsets = [0, 64], sizes = [16, 32], strides = [1, 1]} : vector<16x128xf32> to vector<16x32xf32>
    %c56_5 = arith.constant 56 : index
    %c0_6 = arith.constant 0 : index
    %15 = vector.load %arg1[%c56_5, %c0_6] : memref<184x32xf32, #tpu.memory_space<vmem>>, vector<128x32xf32>
    %16 = tpu.concatenate %13, %13, %13, %13, %13, %13, %13, %13 in 0 : vector<16x32xf32>, vector<16x32xf32>, vector<16x32xf32>, vector<16x32xf32>, vector<16x32xf32>, vector<16x32xf32>, vector<16x32xf32>, vector<16x32xf32> -> vector<128x32xf32>
    %17 = arith.mulf %16, %15 : vector<128x32xf32>
    %18 = tpu.concatenate %14, %14, %14, %14, %14, %14, %14, %14 in 0 : vector<16x32xf32>, vector<16x32xf32>, vector<16x32xf32>, vector<16x32xf32>, vector<16x32xf32>, vector<16x32xf32>, vector<16x32xf32>, vector<16x32xf32> -> vector<128x32xf32>
    %19 = arith.mulf %18, %15 : vector<128x32xf32>
    %cst_7 = arith.constant dense<0.000000e+00> : vector<16x128xf32>
    %20 = tpu.matmul %12, %17, %cst_7 {dimension_numbers = #tpu.dot_dimension_numbers<[1], [1], [0], [0], [0, 0, 1, 0], [], []>} : vector<16x32xf32>, vector<128x32xf32>, vector<16x128xf32> -> vector<16x128xf32>
    %c0_8 = arith.constant 0 : index
    %c0_9 = arith.constant 0 : index
    %21 = vector.load %arg2[%c0_8, %c0_9] : memref<89x128xf32, #tpu.memory_space<vmem>>, vector<16x128xf32>
    %22 = arith.addf %20, %21 : vector<16x128xf32>
    %cst_10 = arith.constant dense<0xFF800000> : vector<16xf32>
    %23 = vector.multi_reduction <maximumf>, %22, %cst_10 [1] : vector<16x128xf32> to vector<16xf32>
    %24 = vector.shape_cast %23 : vector<16xf32> to vector<16x1xf32>
    %25 = vector.broadcast %24 : vector<16x1xf32> to vector<16x128xf32>
    %26 = arith.subf %22, %25 : vector<16x128xf32>
    %27 = math.exp %26 : vector<16x128xf32>
    %cst_11 = arith.constant dense<0.000000e+00> : vector<16x32xf32>
    %28 = tpu.matmul %27, %19, %cst_11 {dimension_numbers = #tpu.dot_dimension_numbers<[1], [0], [0], [1], [0, 0, 1, 1], [], []>} : vector<16x128xf32>, vector<128x32xf32>, vector<16x32xf32> -> vector<16x32xf32>
    %cst_12 = arith.constant dense<0.000000e+00> : vector<16x32xf32>
    %29 = tpu.matmul %27, %15, %cst_12 {dimension_numbers = #tpu.dot_dimension_numbers<[1], [0], [0], [1], [0, 0, 1, 1], [], []>} : vector<16x128xf32>, vector<128x32xf32>, vector<16x32xf32> -> vector<16x32xf32>
    %30 = tpu.reciprocal %29 {approx = true} : vector<16x32xf32> -> vector<16x32xf32>
    %31 = arith.mulf %28, %30 : vector<16x32xf32>
    %c24 = arith.constant 24 : index
    %c0_13 = arith.constant 0 : index
    %32 = vector.load %arg1[%c24, %c0_13] : memref<184x32xf32, #tpu.memory_space<vmem>>, vector<32x32xf32>
    %cst_14 = arith.constant dense<0.000000e+00> : vector<16x32xf32>
    %33 = tpu.matmul %31, %32, %cst_14 {dimension_numbers = #tpu.dot_dimension_numbers<[1], [0], [0], [1], [0, 0, 1, 1], [], []>} : vector<16x32xf32>, vector<32x32xf32>, vector<16x32xf32> -> vector<16x32xf32>
    %c16 = arith.constant 16 : index
    %c0_15 = arith.constant 0 : index
    %34 = vector.load %arg1[%c16, %c0_15] : memref<184x32xf32, #tpu.memory_space<vmem>>, vector<1x32xf32>
    %35 = vector.broadcast %34 : vector<1x32xf32> to vector<16x32xf32>
    %36 = arith.addf %33, %35 : vector<16x32xf32>
    %37 = arith.addf %6, %36 : vector<16x32xf32>
    %c17 = arith.constant 17 : index
    %c0_16 = arith.constant 0 : index
    %38 = vector.load %arg1[%c17, %c0_16] : memref<184x32xf32, #tpu.memory_space<vmem>>, vector<1x32xf32>
    %c18 = arith.constant 18 : index
    %c0_17 = arith.constant 0 : index
    %39 = vector.load %arg1[%c18, %c0_17] : memref<184x32xf32, #tpu.memory_space<vmem>>, vector<1x32xf32>
    %cst_18 = arith.constant dense<0.000000e+00> : vector<16xf32>
    %40 = vector.multi_reduction <add>, %37, %cst_18 [1] : vector<16x32xf32> to vector<16xf32>
    %41 = vector.shape_cast %40 : vector<16xf32> to vector<16x1xf32>
    %cst_19 = arith.constant 3.200000e+01 : f32
    %42 = vector.broadcast %cst_19 : f32 to vector<16x1xf32>
    %43 = arith.divf %41, %42 : vector<16x1xf32>
    %44 = vector.broadcast %43 : vector<16x1xf32> to vector<16x32xf32>
    %45 = arith.subf %37, %44 : vector<16x32xf32>
    %46 = arith.mulf %45, %45 : vector<16x32xf32>
    %cst_20 = arith.constant dense<0.000000e+00> : vector<16xf32>
    %47 = vector.multi_reduction <add>, %46, %cst_20 [1] : vector<16x32xf32> to vector<16xf32>
    %48 = vector.shape_cast %47 : vector<16xf32> to vector<16x1xf32>
    %cst_21 = arith.constant 3.200000e+01 : f32
    %49 = vector.broadcast %cst_21 : f32 to vector<16x1xf32>
    %50 = arith.divf %48, %49 : vector<16x1xf32>
    %51 = vector.broadcast %43 : vector<16x1xf32> to vector<16x32xf32>
    %52 = arith.subf %37, %51 : vector<16x32xf32>
    %cst_22 = arith.constant 9.99999974E-6 : f32
    %53 = vector.broadcast %cst_22 : f32 to vector<16x1xf32>
    %54 = arith.addf %50, %53 : vector<16x1xf32>
    %55 = math.rsqrt %54 : vector<16x1xf32>
    %56 = vector.broadcast %55 : vector<16x1xf32> to vector<16x32xf32>
    %57 = arith.mulf %52, %56 : vector<16x32xf32>
    %58 = vector.broadcast %38 : vector<1x32xf32> to vector<16x32xf32>
    %59 = arith.mulf %57, %58 : vector<16x32xf32>
    %60 = vector.broadcast %39 : vector<1x32xf32> to vector<16x32xf32>
    %61 = arith.addf %59, %60 : vector<16x32xf32>
    %c0_i32_23 = arith.constant 0 : i32
    %62 = tpu.memref_slice %arg8[%c0_i32_23] : memref<2x!tpu.dma_semaphore, #tpu.memory_space<semaphore_mem>> -> memref<1x!tpu.dma_semaphore, #tpu.memory_space<semaphore_mem>>
    %63 = tpu.memref_squeeze %62 : memref<1x!tpu.dma_semaphore, #tpu.memory_space<semaphore_mem>> -> memref<!tpu.dma_semaphore, #tpu.memory_space<semaphore_mem>>
    tpu.wait_dma2 semaphore(%63 : memref<!tpu.dma_semaphore, #tpu.memory_space<semaphore_mem>>) src(%arg3 : memref<33x2048xbf16, #tpu.memory_space<any>>) dst(%arg6 : memref<33x2048xbf16, #tpu.memory_space<vmem>>)
    %c1_i32_24 = arith.constant 1 : i32
    %64 = tpu.memref_slice %arg8[%c1_i32_24] : memref<2x!tpu.dma_semaphore, #tpu.memory_space<semaphore_mem>> -> memref<1x!tpu.dma_semaphore, #tpu.memory_space<semaphore_mem>>
    %65 = tpu.memref_squeeze %64 : memref<1x!tpu.dma_semaphore, #tpu.memory_space<semaphore_mem>> -> memref<!tpu.dma_semaphore, #tpu.memory_space<semaphore_mem>>
    tpu.wait_dma2 semaphore(%65 : memref<!tpu.dma_semaphore, #tpu.memory_space<semaphore_mem>>) src(%arg4 : memref<2048x32xbf16, #tpu.memory_space<any>>) dst(%arg7 : memref<2048x32xbf16, #tpu.memory_space<vmem>>)
    %66 = arith.truncf %61 : vector<16x32xf32> to vector<16x32xbf16>
    %c0_25 = arith.constant 0 : index
    %c0_26 = arith.constant 0 : index
    %67 = vector.load %arg6[%c0_25, %c0_26] : memref<33x2048xbf16, #tpu.memory_space<vmem>>, vector<32x2048xbf16>
    %cst_27 = arith.constant dense<0.000000e+00> : vector<16x2048xf32>
    %68 = tpu.matmul %66, %67, %cst_27 {dimension_numbers = #tpu.dot_dimension_numbers<[1], [0], [0], [1], [0, 0, 1, 1], [], []>} : vector<16x32xbf16>, vector<32x2048xbf16>, vector<16x2048xf32> -> vector<16x2048xf32>
    %c32 = arith.constant 32 : index
    %c0_28 = arith.constant 0 : index
    %69 = vector.load %arg6[%c32, %c0_28] : memref<33x2048xbf16, #tpu.memory_space<vmem>>, vector<1x2048xbf16>
    %70 = arith.extf %69 : vector<1x2048xbf16> to vector<1x2048xf32>
    %71 = vector.broadcast %70 : vector<1x2048xf32> to vector<16x2048xf32>
    %72 = arith.addf %68, %71 : vector<16x2048xf32>
    %cst_29 = arith.constant 0.000000e+00 : f32
    %73 = vector.broadcast %cst_29 : f32 to vector<16x2048xf32>
    %74 = arith.maximumf %72, %73 : vector<16x2048xf32>
    %75 = arith.truncf %74 : vector<16x2048xf32> to vector<16x2048xbf16>
    %c0_30 = arith.constant 0 : index
    %c0_31 = arith.constant 0 : index
    %76 = vector.load %arg7[%c0_30, %c0_31] : memref<2048x32xbf16, #tpu.memory_space<vmem>>, vector<2048x32xbf16>
    %cst_32 = arith.constant dense<0.000000e+00> : vector<16x32xf32>
    %77 = tpu.matmul %75, %76, %cst_32 {dimension_numbers = #tpu.dot_dimension_numbers<[1], [0], [0], [1], [0, 0, 1, 1], [], []>} : vector<16x2048xbf16>, vector<2048x32xbf16>, vector<16x32xf32> -> vector<16x32xf32>
    %c19 = arith.constant 19 : index
    %c0_33 = arith.constant 0 : index
    %78 = vector.load %arg1[%c19, %c0_33] : memref<184x32xf32, #tpu.memory_space<vmem>>, vector<1x32xf32>
    %79 = vector.broadcast %78 : vector<1x32xf32> to vector<16x32xf32>
    %80 = arith.addf %77, %79 : vector<16x32xf32>
    %81 = arith.addf %61, %80 : vector<16x32xf32>
    %c20 = arith.constant 20 : index
    %c0_34 = arith.constant 0 : index
    %82 = vector.load %arg1[%c20, %c0_34] : memref<184x32xf32, #tpu.memory_space<vmem>>, vector<1x32xf32>
    %c21 = arith.constant 21 : index
    %c0_35 = arith.constant 0 : index
    %83 = vector.load %arg1[%c21, %c0_35] : memref<184x32xf32, #tpu.memory_space<vmem>>, vector<1x32xf32>
    %cst_36 = arith.constant dense<0.000000e+00> : vector<16xf32>
    %84 = vector.multi_reduction <add>, %81, %cst_36 [1] : vector<16x32xf32> to vector<16xf32>
    %85 = vector.shape_cast %84 : vector<16xf32> to vector<16x1xf32>
    %cst_37 = arith.constant 3.200000e+01 : f32
    %86 = vector.broadcast %cst_37 : f32 to vector<16x1xf32>
    %87 = arith.divf %85, %86 : vector<16x1xf32>
    %88 = vector.broadcast %87 : vector<16x1xf32> to vector<16x32xf32>
    %89 = arith.subf %81, %88 : vector<16x32xf32>
    %90 = arith.mulf %89, %89 : vector<16x32xf32>
    %cst_38 = arith.constant dense<0.000000e+00> : vector<16xf32>
    %91 = vector.multi_reduction <add>, %90, %cst_38 [1] : vector<16x32xf32> to vector<16xf32>
    %92 = vector.shape_cast %91 : vector<16xf32> to vector<16x1xf32>
    %cst_39 = arith.constant 3.200000e+01 : f32
    %93 = vector.broadcast %cst_39 : f32 to vector<16x1xf32>
    %94 = arith.divf %92, %93 : vector<16x1xf32>
    %95 = vector.broadcast %87 : vector<16x1xf32> to vector<16x32xf32>
    %96 = arith.subf %81, %95 : vector<16x32xf32>
    %cst_40 = arith.constant 9.99999974E-6 : f32
    %97 = vector.broadcast %cst_40 : f32 to vector<16x1xf32>
    %98 = arith.addf %94, %97 : vector<16x1xf32>
    %99 = math.rsqrt %98 : vector<16x1xf32>
    %100 = vector.broadcast %99 : vector<16x1xf32> to vector<16x32xf32>
    %101 = arith.mulf %96, %100 : vector<16x32xf32>
    %102 = vector.broadcast %82 : vector<1x32xf32> to vector<16x32xf32>
    %103 = arith.mulf %101, %102 : vector<16x32xf32>
    %104 = vector.broadcast %83 : vector<1x32xf32> to vector<16x32xf32>
    %105 = arith.addf %103, %104 : vector<16x32xf32>
    %c16_41 = arith.constant 16 : index
    %c0_42 = arith.constant 0 : index
    %106 = vector.load %arg2[%c16_41, %c0_42] : memref<89x128xf32, #tpu.memory_space<vmem>>, vector<32x128xf32>
    %cst_43 = arith.constant dense<0.000000e+00> : vector<16x128xf32>
    %107 = tpu.matmul %105, %106, %cst_43 {dimension_numbers = #tpu.dot_dimension_numbers<[1], [0], [0], [1], [0, 0, 1, 1], [], []>} : vector<16x32xf32>, vector<32x128xf32>, vector<16x128xf32> -> vector<16x128xf32>
    %c48 = arith.constant 48 : index
    %c0_44 = arith.constant 0 : index
    %108 = vector.load %arg2[%c48, %c0_44] : memref<89x128xf32, #tpu.memory_space<vmem>>, vector<1x128xf32>
    %109 = vector.broadcast %108 : vector<1x128xf32> to vector<16x128xf32>
    %110 = arith.addf %107, %109 : vector<16x128xf32>
    %c0_45 = arith.constant 0 : index
    %c0_46 = arith.constant 0 : index
    %111 = vector.load %arg5[%c0_45, %c0_46] : memref<16x128xf32, #tpu.memory_space<vmem>>, vector<16x128xf32>
    tpu.vector_store %arg5[%c0_45, %c0_46], %110 {strides = array<i32>} : memref<16x128xf32, #tpu.memory_space<vmem>>, vector<16x128xf32>,
    return
  }
}

</mosaic_0001>

<bundles_post_ra>
// kernel: transformer_forward.1
= control target key start
LH: loop header
LB: loop body
LE: loop exit
PB: predicated region body
PF: predicated region fallthrough
CT: control target
= control target key end

     0   :  { %s4657_s0 = inlined_call_operand.vmem [shape: f32[16,32], index: 0, kind: input, shape index: {}]   ;;  %s4658_s1 = inlined_call_operand.vmem [shape: f32[184,32], index: 1, kind: input, shape index: {}]   ;;  %s4659_s2 = inlined_call_operand.vmem [shape: f32[89,128], index: 2, kind: input, shape index: {}]   ;;  %s4660_s3 = inlined_call_operand.vmem [shape: bf16[33,2048], index: 3, kind: input, shape index: {}]   ;;  %s4661_s4 = inlined_call_operand.vmem [shape: bf16[2048,32], index: 4, kind: input, shape index: {}]   ;;  %s4662_s5 = inlined_call_operand.vmem [shape: f32[16,128], index: 5, kind: output, shape index: {}]  }
   0x1   :  { %v27_v0 = vld [vmem:[%s4660_s3] sm:$0xff]  ;;  %v29_v1 = vld [vmem:[%s4660_s3 + $0x8] sm:$0xff]  ;;  %v31_v2 = vld [vmem:[%s4660_s3 + $0x10] sm:$0xff] }
   0x2   :  { %28 = vst [vmem:[#allocation2] sm:$0xff] %v27_v0  ;;  %v33_v3 = vld [vmem:[%s4660_s3 + $0x18] sm:$0xff]  ;;  %v35_v4 = vld [vmem:[%s4660_s3 + $0x20] sm:$0xff]  ;;  %v37_v5 = vld [vmem:[%s4660_s3 + $0x28] sm:$0xff] }
   0x3   :  { %30 = vst [vmem:[#allocation2 + $0x8] sm:$0xff] %v29_v1  ;;  %v39_v6 = vld [vmem:[%s4660_s3 + $0x30] sm:$0xff]  ;;  %v41_v7 = vld [vmem:[%s4660_s3 + $0x38] sm:$0xff]  ;;  %v43_v8 = vld [vmem:[%s4660_s3 + $0x40] sm:$0xff] }
   0x4   :  { %32 = vst [vmem:[#allocation2 + $0x10] sm:$0xff] %v31_v2  ;;  %v45_v9 = vld [vmem:[%s4660_s3 + $0x48] sm:$0xff]  ;;  %v47_v10 = vld [vmem:[%s4660_s3 + $0x50] sm:$0xff]  ;;  %v49_v11 = vld [vmem:[%s4660_s3 + $0x58] sm:$0xff] }
   0x5   :  { %34 = vst [vmem:[#allocation2 + $0x18] sm:$0xff] %v33_v3  ;;  %v51_v12 = vld [vmem:[%s4660_s3 + $0x60] sm:$0xff]  ;;  %v53_v13 = vld [vmem:[%s4660_s3 + $0x68] sm:$0xff]  ;;  %v55_v14 = vld [vmem:[%s4660_s3 + $0x70] sm:$0xff] }
   0x6   :  { %36 = vst [vmem:[#allocation2 + $0x20] sm:$0xff] %v35_v4  ;;  %v57_v15 = vld [vmem:[%s4660_s3 + $0x78] sm:$0xff]  ;;  %v59_v16 = vld [vmem:[%s4660_s3 + $0x80] sm:$0xff]  ;;  %v61_v17 = vld [vmem:[%s4660_s3 + $0x88] sm:$0xff] }
   0x7   :  { %38 = vst [vmem:[#allocation2 + $0x28] sm:$0xff] %v37_v5  ;;  %v63_v18 = vld [vmem:[%s4660_s3 + $0x90] sm:$0xff]  ;;  %v65_v19 = vld [vmem:[%s4660_s3 + $0x98] sm:$0xff]  ;;  %v67_v20 = vld [vmem:[%s4660_s3 + $0xa0] sm:$0xff] }
   0x8   :  { %40 = vst [vmem:[#allocation2 + $0x30] sm:$0xff] %v39_v6  ;;  %v69_v21 = vld [vmem:[%s4660_s3 + $0xa8] sm:$0xff]  ;;  %v71_v22 = vld [vmem:[%s4660_s3 + $0xb0] sm:$0xff]  ;;  %v73_v23 = vld [vmem:[%s4660_s3 + $0xb8] sm:$0xff] }
   0x9   :  { %42 = vst [vmem:[#allocation2 + $0x38] sm:$0xff] %v41_v7  ;;  %v75_v24 = vld [vmem:[%s4660_s3 + $0xc0] sm:$0xff]  ;;  %v77_v25 = vld [vmem:[%s4660_s3 + $0xc8] sm:$0xff]  ;;  %v79_v26 = vld [vmem:[%s4660_s3 + $0xd0] sm:$0xff] }
   0xa   :  { %44 = vst [vmem:[#allocation2 + $0x40] sm:$0xff] %v43_v8  ;;  %v81_v27 = vld [vmem:[%s4660_s3 + $0xd8] sm:$0xff]  ;;  %v83_v28 = vld [vmem:[%s4660_s3 + $0xe0] sm:$0xff]  ;;  %v85_v29 = vld [vmem:[%s4660_s3 + $0xe8] sm:$0xff] }
   0xb   :  { %46 = vst [vmem:[#allocation2 + $0x48] sm:$0xff] %v45_v9  ;;  %v87_v30 = vld [vmem:[%s4660_s3 + $0xf0] sm:$0xff]  ;;  %v89_v31 = vld [vmem:[%s4660_s3 + $0xf8] sm:$0xff]  ;;  %v91_v32 = vld [vmem:[%s4660_s3 + $0x100] sm:$0xff] }
   0xc   :  { %48 = vst [vmem:[#allocation2 + $0x50] sm:$0xff] %v47_v10  ;;  %v93_v33 = vld [vmem:[%s4660_s3 + $0x108] sm:$0xff]  ;;  %v95_v34 = vld [vmem:[%s4660_s3 + $0x110] sm:$0xff]  ;;  %v97_v35 = vld [vmem:[%s4660_s3 + $0x118] sm:$0xff] }
   0xd   :  { %50 = vst [vmem:[#allocation2 + $0x58] sm:$0xff] %v49_v11  ;;  %v99_v36 = vld [vmem:[%s4660_s3 + $0x120] sm:$0xff]  ;;  %v101_v37 = vld [vmem:[%s4660_s3 + $0x128] sm:$0xff]  ;;  %v103_v38 = vld [vmem:[%s4660_s3 + $0x130] sm:$0xff] }
   0xe   :  { %52 = vst [vmem:[#allocation2 + $0x60] sm:$0xff] %v51_v12  ;;  %v105_v39 = vld [vmem:[%s4660_s3 + $0x138] sm:$0xff] }
   0xf   :  { %54 = vst [vmem:[#allocation2 + $0x68] sm:$0xff] %v53_v13 }
  0x10   :  { %56 = vst [vmem:[#allocation2 + $0x70] sm:$0xff] %v55_v14 }
  0x11   :  { %58 = vst [vmem:[#allocation2 + $0x78] sm:$0xff] %v57_v15 }
  0x12   :  { %60 = vst [vmem:[#allocation2 + $0x80] sm:$0xff] %v59_v16 }
  0x13   :  { %62 = vst [vmem:[#allocation2 + $0x88] sm:$0xff] %v61_v17 }
  0x14   :  { %64 = vst [vmem:[#allocation2 + $0x90] sm:$0xff] %v63_v18 }
  0x15   :  { %66 = vst [vmem:[#allocation2 + $0x98] sm:$0xff] %v65_v19 }
  0x16   :  { %68 = vst [vmem:[#allocation2 + $0xa0] sm:$0xff] %v67_v20 }
  0x17   :  { %70 = vst [vmem:[#allocation2 + $0xa8] sm:$0xff] %v69_v21 }
  0x18   :  { %72 = vst [vmem:[#allocation2 + $0xb0] sm:$0xff] %v71_v22 }
  0x19   :  { %74 = vst [vmem:[#allocation2 + $0xb8] sm:$0xff] %v73_v23 }
  0x1a   :  { %76 = vst [vmem:[#allocation2 + $0xc0] sm:$0xff] %v75_v24 }
  0x1b   :  { %78 = vst [vmem:[#allocation2 + $0xc8] sm:$0xff] %v77_v25 }
  0x1c   :  { %80 = vst [vmem:[#allocation2 + $0xd0] sm:$0xff] %v79_v26 }
  0x1d   :  { %82 = vst [vmem:[#allocation2 + $0xd8] sm:$0xff] %v81_v27 }
  0x1e   :  { %84 = vst [vmem:[#allocation2 + $0xe0] sm:$0xff] %v83_v28 }
  0x1f   :  { %86 = vst [vmem:[#allocation2 + $0xe8] sm:$0xff] %v85_v29 }
  0x20   :  { %88 = vst [vmem:[#allocation2 + $0xf0] sm:$0xff] %v87_v30 }
  0x21   :  { %90 = vst [vmem:[#allocation2 + $0xf8] sm:$0xff] %v89_v31 }
  0x22   :  { %92 = vst [vmem:[#allocation2 + $0x100] sm:$0xff] %v91_v32 }
  0x23   :  { %94 = vst [vmem:[#allocation2 + $0x108] sm:$0xff] %v93_v33 }
  0x24   :  { %96 = vst [vmem:[#allocation2 + $0x110] sm:$0xff] %v95_v34 }
  0x25   :  { %98 = vst [vmem:[#allocation2 + $0x118] sm:$0xff] %v97_v35 }
  0x26   :  { %100 = vst [vmem:[#allocation2 + $0x120] sm:$0xff] %v99_v36 }
  0x27   :  { %102 = vst [vmem:[#allocation2 + $0x128] sm:$0xff] %v101_v37 }
  0x28   :  { %104 = vst [vmem:[#allocation2 + $0x130] sm:$0xff] %v103_v38 }
  0x29   :  { %106 = vst [vmem:[#allocation2 + $0x138] sm:$0xff] %v105_v39 }
  0x2a   :  { %112 = vsyncadd [#allocation4], 5120  ;;  %v124_v40 = vld [vmem:[%s4661_s4] sm:$0xff]  ;;  %v126_v41 = vld [vmem:[%s4661_s4 + $0x8] sm:$0xff] }
  0x2b   :  { %125 = vst [vmem:[#allocation3 + $0x2b0] sm:$0xff] %v124_v40  ;;  %v128_v42 = vld [vmem:[%s4661_s4 + $0x10] sm:$0xff]  ;;  %v130_v43 = vld [vmem:[%s4661_s4 + $0x18] sm:$0xff]  ;;  %v132_v44 = vld [vmem:[%s4661_s4 + $0x20] sm:$0xff] }
  0x2c   :  { %127 = vst [vmem:[#allocation3 + $0x3b0] sm:$0xff] %v126_v41  ;;  %v134_v45 = vld [vmem:[%s4661_s4 + $0x28] sm:$0xff]  ;;  %v136_v46 = vld [vmem:[%s4661_s4 + $0x30] sm:$0xff]  ;;  %v138_v47 = vld [vmem:[%s4661_s4 + $0x38] sm:$0xff] }
  0x2d   :  { %129 = vst [vmem:[#allocation3 + $0xd8] sm:$0xff] %v128_v42  ;;  %v140_v48 = vld [vmem:[%s4661_s4 + $0x40] sm:$0xff]  ;;  %v142_v49 = vld [vmem:[%s4661_s4 + $0x48] sm:$0xff]  ;;  %v144_v50 = vld [vmem:[%s4661_s4 + $0x50] sm:$0xff] }
  0x2e   :  { %131 = vst [vmem:[#allocation3 + $0x18] sm:$0xff] %v130_v43  ;;  %v146_v51 = vld [vmem:[%s4661_s4 + $0x58] sm:$0xff]  ;;  %v148_v52 = vld [vmem:[%s4661_s4 + $0x60] sm:$0xff]  ;;  %v150_v53 = vld [vmem:[%s4661_s4 + $0x68] sm:$0xff] }
  0x2f   :  { %133 = vst [vmem:[#allocation3 + $0x50] sm:$0xff] %v132_v44  ;;  %v152_v54 = vld [vmem:[%s4661_s4 + $0x70] sm:$0xff]  ;;  %v154_v55 = vld [vmem:[%s4661_s4 + $0x78] sm:$0xff]  ;;  %v156_v56 = vld [vmem:[%s4661_s4 + $0x80] sm:$0xff] }
  0x30   :  { %135 = vst [vmem:[#allocation3 + $0x368] sm:$0xff] %v134_v45  ;;  %v158_v57 = vld [vmem:[%s4661_s4 + $0x88] sm:$0xff]  ;;  %v160_v58 = vld [vmem:[%s4661_s4 + $0x90] sm:$0xff]  ;;  %v162_v59 = vld [vmem:[%s4661_s4 + $0x98] sm:$0xff] }
  0x31   :  { %137 = vst [vmem:[#allocation3 + $0x330] sm:$0xff] %v136_v46  ;;  %v164_v60 = vld [vmem:[%s4661_s4 + $0xa0] sm:$0xff]  ;;  %v166_v61 = vld [vmem:[%s4661_s4 + $0xa8] sm:$0xff]  ;;  %v168_v62 = vld [vmem:[%s4661_s4 + $0xb0] sm:$0xff] }
  0x32   :  { %139 = vst [vmem:[#allocation3 + $0x48] sm:$0xff] %v138_v47  ;;  %v170_v63 = vld [vmem:[%s4661_s4 + $0xb8] sm:$0xff]  ;;  %v172_v0 = vld [vmem:[%s4661_s4 + $0xc0] sm:$0xff]  ;;  %v174_v1 = vld [vmem:[%s4661_s4 + $0xc8] sm:$0xff] }
  0x33   :  { %141 = vst [vmem:[#allocation3 + $0x380] sm:$0xff] %v140_v48  ;;  %v176_v2 = vld [vmem:[%s4661_s4 + $0xd0] sm:$0xff]  ;;  %v178_v3 = vld [vmem:[%s4661_s4 + $0xd8] sm:$0xff]  ;;  %v180_v4 = vld [vmem:[%s4661_s4 + $0xe0] sm:$0xff] }
  0x34   :  { %143 = vst [vmem:[#allocation3 + $0x110] sm:$0xff] %v142_v49  ;;  %v182_v5 = vld [vmem:[%s4661_s4 + $0xe8] sm:$0xff]  ;;  %v184_v6 = vld [vmem:[%s4661_s4 + $0xf0] sm:$0xff]  ;;  %v186_v7 = vld [vmem:[%s4661_s4 + $0xf8] sm:$0xff] }
  0x35   :  { %145 = vst [vmem:[#allocation3 + $0x118] sm:$0xff] %v144_v50  ;;  %v188_v8 = vld [vmem:[%s4661_s4 + $0x100] sm:$0xff]  ;;  %v190_v9 = vld [vmem:[%s4661_s4 + $0x108] sm:$0xff]  ;;  %v192_v10 = vld [vmem:[%s4661_s4 + $0x110] sm:$0xff] }
  0x36   :  { %147 = vst [vmem:[#allocation3 + $0x98] sm:$0xff] %v146_v51  ;;  %v194_v11 = vld [vmem:[%s4661_s4 + $0x118] sm:$0xff]  ;;  %v196_v12 = vld [vmem:[%s4661_s4 + $0x120] sm:$0xff]  ;;  %v198_v13 = vld [vmem:[%s4661_s4 + $0x128] sm:$0xff] }
  0x37   :  { %149 = vst [vmem:[#allocation3 + $0x320] sm:$0xff] %v148_v52  ;;  %v200_v14 = vld [vmem:[%s4661_s4 + $0x130] sm:$0xff]  ;;  %v202_v15 = vld [vmem:[%s4661_s4 + $0x138] sm:$0xff]  ;;  %v204_v16 = vld [vmem:[%s4661_s4 + $0x140] sm:$0xff] }
  0x38   :  { %151 = vst [vmem:[#allocation3 + $0x150] sm:$0xff] %v150_v53  ;;  %v206_v17 = vld [vmem:[%s4661_s4 + $0x148] sm:$0xff]  ;;  %v208_v18 = vld [vmem:[%s4661_s4 + $0x150] sm:$0xff]  ;;  %v210_v19 = vld [vmem:[%s4661_s4 + $0x158] sm:$0xff] }
  0x39   :  { %153 = vst [vmem:[#allocation3 + $0x108] sm:$0xff] %v152_v54  ;;  %v212_v20 = vld [vmem:[%s4661_s4 + $0x160] sm:$0xff]  ;;  %v214_v21 = vld [vmem:[%s4661_s4 + $0x168] sm:$0xff]  ;;  %v216_v22 = vld [vmem:[%s4661_s4 + $0x170] sm:$0xff] }
  0x3a   :  { %155 = vst [vmem:[#allocation3 + $0x60] sm:$0xff] %v154_v55  ;;  %v218_v23 = vld [vmem:[%s4661_s4 + $0x178] sm:$0xff]  ;;  %v220_v24 = vld [vmem:[%s4661_s4 + $0x180] sm:$0xff]  ;;  %v222_v25 = vld [vmem:[%s4661_s4 + $0x188] sm:$0xff] }
  0x3b   :  { %157 = vst [vmem:[#allocation3 + $0x2e0] sm:$0xff] %v156_v56  ;;  %v224_v26 = vld [vmem:[%s4661_s4 + $0x190] sm:$0xff]  ;;  %v226_v27 = vld [vmem:[%s4661_s4 + $0x198] sm:$0xff]  ;;  %v228_v28 = vld [vmem:[%s4661_s4 + $0x1a0] sm:$0xff] }
  0x3c   :  { %159 = vst [vmem:[#allocation3 + $0x388] sm:$0xff] %v158_v57  ;;  %v230_v29 = vld [vmem:[%s4661_s4 + $0x1a8] sm:$0xff]  ;;  %v232_v30 = vld [vmem:[%s4661_s4 + $0x1b0] sm:$0xff]  ;;  %v234_v31 = vld [vmem:[%s4661_s4 + $0x1b8] sm:$0xff] }
  0x3d   :  { %161 = vst [vmem:[#allocation3 + $0x338] sm:$0xff] %v160_v58  ;;  %v236_v32 = vld [vmem:[%s4661_s4 + $0x1c0] sm:$0xff]  ;;  %v238_v33 = vld [vmem:[%s4661_s4 + $0x1c8] sm:$0xff]  ;;  %v240_v34 = vld [vmem:[%s4661_s4 + $0x1d0] sm:$0xff] }
  0x3e   :  { %163 = vst [vmem:[#allocation3 + $0x340] sm:$0xff] %v162_v59  ;;  %v242_v35 = vld [vmem:[%s4661_s4 + $0x1d8] sm:$0xff]  ;;  %v244_v36 = vld [vmem:[%s4661_s4 + $0x1e0] sm:$0xff]  ;;  %v246_v37 = vld [vmem:[%s4661_s4 + $0x1e8] sm:$0xff] }
  0x3f   :  { %165 = vst [vmem:[#allocation3 + $0x80] sm:$0xff] %v164_v60  ;;  %v248_v38 = vld [vmem:[%s4661_s4 + $0x1f0] sm:$0xff]  ;;  %v250_v39 = vld [vmem:[%s4661_s4 + $0x1f8] sm:$0xff]  ;;  %v252_v40 = vld [vmem:[%s4661_s4 + $0x200] sm:$0xff] }
  0x40   :  { %167 = vst [vmem:[#allocation3 + $0x1a8] sm:$0xff] %v166_v61  ;;  %v254_v41 = vld [vmem:[%s4661_s4 + $0x208] sm:$0xff]  ;;  %v256_v42 = vld [vmem:[%s4661_s4 + $0x210] sm:$0xff]  ;;  %v258_v43 = vld [vmem:[%s4661_s4 + $0x218] sm:$0xff] }
  0x41   :  { %169 = vst [vmem:[#allocation3 + $0x1b8] sm:$0xff] %v168_v62  ;;  %v260_v44 = vld [vmem:[%s4661_s4 + $0x220] sm:$0xff]  ;;  %v262_v45 = vld [vmem:[%s4661_s4 + $0x228] sm:$0xff]  ;;  %v264_v46 = vld [vmem:[%s4661_s4 + $0x230] sm:$0xff] }
  0x42   :  { %171 = vst [vmem:[#allocation3 + $0x168] sm:$0xff] %v170_v63  ;;  %v266_v47 = vld [vmem:[%s4661_s4 + $0x238] sm:$0xff]  ;;  %v268_v48 = vld [vmem:[%s4661_s4 + $0x240] sm:$0xff]  ;;  %v270_v49 = vld [vmem:[%s4661_s4 + $0x248] sm:$0xff] }
  0x43   :  { %173 = vst [vmem:[#allocation3 + $0x3e8] sm:$0xff] %v172_v0  ;;  %v272_v50 = vld [vmem:[%s4661_s4 + $0x250] sm:$0xff]  ;;  %v274_v51 = vld [vmem:[%s4661_s4 + $0x258] sm:$0xff]  ;;  %v276_v52 = vld [vmem:[%s4661_s4 + $0x260] sm:$0xff] }
  0x44   :  { %175 = vst [vmem:[#allocation3 + $0x2f8] sm:$0xff] %v174_v1  ;;  %v278_v53 = vld [vmem:[%s4661_s4 + $0x268] sm:$0xff]  ;;  %v280_v54 = vld [vmem:[%s4661_s4 + $0x270] sm:$0xff]  ;;  %v282_v55 = vld [vmem:[%s4661_s4 + $0x278] sm:$0xff] }
  0x45   :  { %177 = vst [vmem:[#allocation3 + $0x290] sm:$0xff] %v176_v2  ;;  %v284_v56 = vld [vmem:[%s4661_s4 + $0x280] sm:$0xff]  ;;  %v286_v57 = vld [vmem:[%s4661_s4 + $0x288] sm:$0xff]  ;;  %v288_v58 = vld [vmem:[%s4661_s4 + $0x290] sm:$0xff] }
  0x46   :  { %179 = vst [vmem:[#allocation3 + $0x28] sm:$0xff] %v178_v3  ;;  %v290_v59 = vld [vmem:[%s4661_s4 + $0x298] sm:$0xff]  ;;  %v292_v60 = vld [vmem:[%s4661_s4 + $0x2a0] sm:$0xff]  ;;  %v294_v61 = vld [vmem:[%s4661_s4 + $0x2a8] sm:$0xff] }
  0x47   :  { %181 = vst [vmem:[#allocation3 + $0x138] sm:$0xff] %v180_v4  ;;  %v296_v62 = vld [vmem:[%s4661_s4 + $0x2b0] sm:$0xff]  ;;  %v298_v63 = vld [vmem:[%s4661_s4 + $0x2b8] sm:$0xff]  ;;  %v300_v0 = vld [vmem:[%s4661_s4 + $0x2c0] sm:$0xff] }
  0x48   :  { %183 = vst [vmem:[#allocation3 + $0xc0] sm:$0xff] %v182_v5  ;;  %v302_v1 = vld [vmem:[%s4661_s4 + $0x2c8] sm:$0xff]  ;;  %v304_v2 = vld [vmem:[%s4661_s4 + $0x2d0] sm:$0xff]  ;;  %v306_v3 = vld [vmem:[%s4661_s4 + $0x2d8] sm:$0xff] }
  0x49   :  { %185 = vst [vmem:[#allocation3 + $0x1c0] sm:$0xff] %v184_v6  ;;  %v308_v4 = vld [vmem:[%s4661_s4 + $0x2e0] sm:$0xff]  ;;  %v310_v5 = vld [vmem:[%s4661_s4 + $0x2e8] sm:$0xff]  ;;  %v312_v6 = vld [vmem:[%s4661_s4 + $0x2f0] sm:$0xff] }
  0x4a   :  { %187 = vst [vmem:[#allocation3 + $0x280] sm:$0xff] %v186_v7  ;;  %v314_v7 = vld [vmem:[%s4661_s4 + $0x2f8] sm:$0xff] }
  0x4b   :  { %189 = vst [vmem:[#allocation3 + $0x100] sm:$0xff] %v188_v8  ;;  %v316_v8 = vld [vmem:[%s4661_s4 + $0x300] sm:$0xff] }
  0x4c   :  { %191 = vst [vmem:[#allocation3 + $0x3c0] sm:$0xff] %v190_v9  ;;  %v318_v9 = vld [vmem:[%s4661_s4 + $0x308] sm:$0xff] }
  0x4d   :  { %193 = vst [vmem:[#allocation3 + $0x158] sm:$0xff] %v192_v10  ;;  %v320_v10 = vld [vmem:[%s4661_s4 + $0x310] sm:$0xff] }
  0x4e   :  { %195 = vst [vmem:[#allocation3 + $0x3e0] sm:$0xff] %v194_v11  ;;  %v322_v11 = vld [vmem:[%s4661_s4 + $0x318] sm:$0xff] }
  0x4f   :  { %197 = vst [vmem:[#allocation3 + $0x218] sm:$0xff] %v196_v12  ;;  %v324_v12 = vld [vmem:[%s4661_s4 + $0x320] sm:$0xff] }
  0x50   :  { %199 = vst [vmem:[#allocation3 + $0x3f8] sm:$0xff] %v198_v13  ;;  %v326_v13 = vld [vmem:[%s4661_s4 + $0x328] sm:$0xff] }
  0x51   :  { %201 = vst [vmem:[#allocation3 + $0x8] sm:$0xff] %v200_v14  ;;  %v328_v14 = vld [vmem:[%s4661_s4 + $0x330] sm:$0xff] }
  0x52   :  { %203 = vst [vmem:[#allocation3 + $0x128] sm:$0xff] %v202_v15  ;;  %v330_v15 = vld [vmem:[%s4661_s4 + $0x338] sm:$0xff] }
  0x53   :  { %205 = vst [vmem:[#allocation3 + $0x2a0] sm:$0xff] %v204_v16  ;;  %v332_v16 = vld [vmem:[%s4661_s4 + $0x340] sm:$0xff] }
  0x54   :  { %207 = vst [vmem:[#allocation3 + $0x3f0] sm:$0xff] %v206_v17  ;;  %v334_v17 = vld [vmem:[%s4661_s4 + $0x348] sm:$0xff] }
  0x55   :  { %209 = vst [vmem:[#allocation3 + $0xa0] sm:$0xff] %v208_v18  ;;  %v336_v18 = vld [vmem:[%s4661_s4 + $0x350] sm:$0xff] }
  0x56   :  { %211 = vst [vmem:[#allocation3 + $0x2c0] sm:$0xff] %v210_v19  ;;  %v338_v19 = vld [vmem:[%s4661_s4 + $0x358] sm:$0xff] }
  0x57   :  { %213 = vst [vmem:[#allocation3 + $0xb0] sm:$0xff] %v212_v20  ;;  %v340_v20 = vld [vmem:[%s4661_s4 + $0x360] sm:$0xff] }
  0x58   :  { %215 = vst [vmem:[#allocation3 + $0x1e0] sm:$0xff] %v214_v21  ;;  %v342_v21 = vld [vmem:[%s4661_s4 + $0x368] sm:$0xff] }
  0x59   :  { %217 = vst [vmem:[#allocation3 + $0x1f0] sm:$0xff] %v216_v22  ;;  %v344_v22 = vld [vmem:[%s4661_s4 + $0x370] sm:$0xff] }
  0x5a   :  { %219 = vst [vmem:[#allocation3 + $0x10] sm:$0xff] %v218_v23  ;;  %v346_v23 = vld [vmem:[%s4661_s4 + $0x378] sm:$0xff] }
  0x5b   :  { %221 = vst [vmem:[#allocation3 + $0x230] sm:$0xff] %v220_v24  ;;  %v348_v24 = vld [vmem:[%s4661_s4 + $0x380] sm:$0xff] }
  0x5c   :  { %223 = vst [vmem:[#allocation3 + $0x240] sm:$0xff] %v222_v25  ;;  %v350_v25 = vld [vmem:[%s4661_s4 + $0x388] sm:$0xff] }
  0x5d   :  { %225 = vst [vmem:[#allocation3 + $0x90] sm:$0xff] %v224_v26  ;;  %v352_v26 = vld [vmem:[%s4661_s4 + $0x390] sm:$0xff] }
  0x5e   :  { %227 = vst [vmem:[#allocation3 + $0x3a0] sm:$0xff] %v226_v27  ;;  %v354_v27 = vld [vmem:[%s4661_s4 + $0x398] sm:$0xff] }
  0x5f   :  { %229 = vst [vmem:[#allocation3 + $0x208] sm:$0xff] %v228_v28  ;;  %v356_v28 = vld [vmem:[%s4661_s4 + $0x3a0] sm:$0xff] }
  0x60   :  { %231 = vst [vmem:[#allocation3 + $0xd0] sm:$0xff] %v230_v29  ;;  %v358_v29 = vld [vmem:[%s4661_s4 + $0x3a8] sm:$0xff] }
  0x61   :  { %233 = vst [vmem:[#allocation3 + $0x88] sm:$0xff] %v232_v30  ;;  %v360_v30 = vld [vmem:[%s4661_s4 + $0x3b0] sm:$0xff] }
  0x62   :  { %235 = vst [vmem:[#allocation3 + $0x2f0] sm:$0xff] %v234_v31  ;;  %v362_v31 = vld [vmem:[%s4661_s4 + $0x3b8] sm:$0xff] }
  0x63   :  { %237 = vst [vmem:[#allocation3 + $0x358] sm:$0xff] %v236_v32  ;;  %v364_v32 = vld [vmem:[%s4661_s4 + $0x3c0] sm:$0xff] }
  0x64   :  { %239 = vst [vmem:[#allocation3 + $0x268] sm:$0xff] %v238_v33  ;;  %v366_v33 = vld [vmem:[%s4661_s4 + $0x3c8] sm:$0xff] }
  0x65   :  { %241 = vst [vmem:[#allocation3 + $0x350] sm:$0xff] %v240_v34  ;;  %v368_v34 = vld [vmem:[%s4661_s4 + $0x3d0] sm:$0xff] }
  0x66   :  { %243 = vst [vmem:[#allocation3 + $0x188] sm:$0xff] %v242_v35  ;;  %v370_v35 = vld [vmem:[%s4661_s4 + $0x3d8] sm:$0xff] }
  0x67   :  { %245 = vst [vmem:[#allocation3 + $0x1d8] sm:$0xff] %v244_v36  ;;  %v372_v36 = vld [vmem:[%s4661_s4 + $0x3e0] sm:$0xff] }
  0x68   :  { %247 = vst [vmem:[#allocation3 + $0x30] sm:$0xff] %v246_v37  ;;  %v374_v37 = vld [vmem:[%s4661_s4 + $0x3e8] sm:$0xff] }
  0x69   :  { %249 = vst [vmem:[#allocation3 + $0x140] sm:$0xff] %v248_v38  ;;  %v376_v38 = vld [vmem:[%s4661_s4 + $0x3f0] sm:$0xff] }
  0x6a   :  { %251 = vst [vmem:[#allocation3 + $0x2a8] sm:$0xff] %v250_v39  ;;  %v378_v39 = vld [vmem:[%s4661_s4 + $0x3f8] sm:$0xff] }
  0x6b   :  { %253 = vst [vmem:[#allocation3 + $0x130] sm:$0xff] %v252_v40  ;;  %v4258_v40 = vld [vmem:[%s4658_s1 + $0xb0] sm:$0xff] }
  0x6c   :  { %255 = vst [vmem:[#allocation3 + $0x200] sm:$0xff] %v254_v41 }
  0x6d   :  { %257 = vst [vmem:[#allocation3 + $0x318] sm:$0xff] %v256_v42 }
  0x6e   :  { %259 = vst [vmem:[#allocation3 + $0x220] sm:$0xff] %v258_v43 }
  0x6f   :  { %261 = vst [vmem:[#allocation3 + $0x70] sm:$0xff] %v260_v44 }
  0x70   :  { %263 = vst [vmem:[#allocation3 + $0x300] sm:$0xff] %v262_v45 }
  0x71   :  { %265 = vst [vmem:[#allocation3 + $0xe0] sm:$0xff] %v264_v46 }
  0x72   :  { %267 = vst [vmem:[#allocation3 + $0x178] sm:$0xff] %v266_v47 }
  0x73   :  { %269 = vst [vmem:[#allocation3 + $0x328] sm:$0xff] %v268_v48 }
  0x74   :  { %271 = vst [vmem:[#allocation3 + $0x260] sm:$0xff] %v270_v49 }
  0x75   :  { %273 = vst [vmem:[#allocation3 + $0x3b8] sm:$0xff] %v272_v50 }
  0x76   :  { %275 = vst [vmem:[#allocation3 + $0x2b8] sm:$0xff] %v274_v51 }
  0x77   :  { %277 = vst [vmem:[#allocation3 + $0x248] sm:$0xff] %v276_v52 }
  0x78   :  { %279 = vst [vmem:[#allocation3 + $0x40] sm:$0xff] %v278_v53 }
  0x79   :  { %281 = vst [vmem:[#allocation3 + $0x20] sm:$0xff] %v280_v54 }
  0x7a   :  { %283 = vst [vmem:[#allocation3 + $0xe8] sm:$0xff] %v282_v55 }
  0x7b   :  { %285 = vst [vmem:[#allocation3 + $0x288] sm:$0xff] %v284_v56 }
  0x7c   :  { %287 = vst [vmem:[#allocation3 + $0x3a8] sm:$0xff] %v286_v57 }
  0x7d   :  { %289 = vst [vmem:[#allocation3 + $0x3c8] sm:$0xff] %v288_v58 }
  0x7e   :  { %291 = vst [vmem:[#allocation3 + $0x160] sm:$0xff] %v290_v59 }
  0x7f   :  { %293 = vst [vmem:[#allocation3 + $0x2c8] sm:$0xff] %v292_v60 }
  0x80   :  { %295 = vst [vmem:[#allocation3 + $0x210] sm:$0xff] %v294_v61 }
  0x81   :  { %297 = vst [vmem:[#allocation3 + $0x3d8] sm:$0xff] %v296_v62 }
  0x82   :  { %299 = vst [vmem:[#allocation3 + $0x1e8] sm:$0xff] %v298_v63 }
  0x83   :  { %301 = vst [vmem:[#allocation3 + $0x1b0] sm:$0xff] %v300_v0 }
  0x84   :  { %303 = vst [vmem:[#allocation3 + $0x1c8] sm:$0xff] %v302_v1 }
  0x85   :  { %305 = vst [vmem:[#allocation3 + $0x2d0] sm:$0xff] %v304_v2 }
  0x86   :  { %307 = vst [vmem:[#allocation3 + $0x1d0] sm:$0xff] %v306_v3 }
  0x87   :  { %309 = vst [vmem:[#allocation3 + $0x58] sm:$0xff] %v308_v4 }
  0x88   :  { %311 = vst [vmem:[#allocation3 + $0x120] sm:$0xff] %v310_v5 }
  0x89   :  { %313 = vst [vmem:[#allocation3 + $0x198] sm:$0xff] %v312_v6 }
  0x8a   :  { %315 = vst [vmem:[#allocation3 + $0x2e8] sm:$0xff] %v314_v7 }
  0x8b   :  { %317 = vst [vmem:[#allocation3 + $0x1f8] sm:$0xff] %v316_v8 }
  0x8c   :  { %319 = vst [vmem:[#allocation3 + $0x238] sm:$0xff] %v318_v9 }
  0x8d   :  { %321 = vst [vmem:[#allocation3 + $0x398] sm:$0xff] %v320_v10 }
  0x8e   :  { %323 = vst [vmem:[#allocation3 + $0x390] sm:$0xff] %v322_v11 }
  0x8f   :  { %325 = vst [vmem:[#allocation3 + $0x1a0] sm:$0xff] %v324_v12 }
  0x90   :  { %327 = vst [vmem:[#allocation3 + $0xa8] sm:$0xff] %v326_v13 }
  0x91   :  { %329 = vst [vmem:[#allocation3 + $0x258] sm:$0xff] %v328_v14 }
  0x92   :  { %331 = vst [vmem:[#allocation3 + $0x2d8] sm:$0xff] %v330_v15 }
  0x93   :  { %333 = vst [vmem:[#allocation3 + $0xf0] sm:$0xff] %v332_v16 }
  0x94   :  { %335 = vst [vmem:[#allocation3 + $0x180] sm:$0xff] %v334_v17 }
  0x95   :  { %337 = vst [vmem:[#allocation3 + $0x170] sm:$0xff] %v336_v18 }
  0x96   :  { %339 = vst [vmem:[#allocation3 + $0x3d0] sm:$0xff] %v338_v19 }
  0x97   :  { %341 = vst [vmem:[#allocation3 + $0x250] sm:$0xff] %v340_v20 }
  0x98   :  { %343 = vst [vmem:[#allocation3 + $0x378] sm:$0xff] %v342_v21 }
  0x99   :  { %345 = vst [vmem:[#allocation3 + $0xb8] sm:$0xff] %v344_v22 }
  0x9a   :  { %347 = vst [vmem:[#allocation3 + $0x38] sm:$0xff] %v346_v23 }
  0x9b   :  { %349 = vst [vmem:[#allocation3 + $0x78] sm:$0xff] %v348_v24 }
  0x9c   :  { %351 = vst [vmem:[#allocation3 + $0x308] sm:$0xff] %v350_v25 }
  0x9d   :  { %353 = vst [vmem:[#allocation3 + $0x370] sm:$0xff] %v352_v26 }
  0x9e   :  { %355 = vst [vmem:[#allocation3 + $0xc8] sm:$0xff] %v354_v27 }
  0x9f   :  { %357 = vst [vmem:[#allocation3 + $0x278] sm:$0xff] %v356_v28 }
  0xa0   :  { %359 = vst [vmem:[#allocation3 + $0x360] sm:$0xff] %v358_v29 }
  0xa1   :  { %361 = vst [vmem:[#allocation3 + $0x228] sm:$0xff] %v360_v30 }
  0xa2   :  { %363 = vst [vmem:[#allocation3 + $0x348] sm:$0xff] %v362_v31 }
  0xa3   :  { %365 = vst [vmem:[#allocation3 + $0x148] sm:$0xff] %v364_v32 }
  0xa4   :  { %367 = vst [vmem:[#allocation3 + $0xf8] sm:$0xff] %v366_v33 }
  0xa5   :  { %369 = vst [vmem:[#allocation3 + $0x68] sm:$0xff] %v368_v34 }
  0xa6   :  { %371 = vst [vmem:[#allocation3] sm:$0xff] %v370_v35 }
  0xa7   :  { %373 = vst [vmem:[#allocation3 + $0x298] sm:$0xff] %v372_v36 }
  0xa8   :  { %375 = vst [vmem:[#allocation3 + $0x270] sm:$0xff] %v374_v37 }
  0xa9   :  { %377 = vst [vmem:[#allocation3 + $0x310] sm:$0xff] %v376_v38 }
  0xaa   :  { %379 = vst [vmem:[#allocation3 + $0x190] sm:$0xff] %v378_v39 }
  0xab   :  { %385 = vsyncadd [#allocation4 + $0x1], 16384  ;;  %v395_v41 = vld [vmem:[%s4659_s2 + $0x50] sm:$0xff]  ;;  %s3717_s23 = smov 32   ;;  %v394_v42 = vld [vmem:[%s4659_s2 + $0x48] sm:$0xff]  ;;  %796 = vmatpush.msra.mxu3 %v4258_v40  ;;  %vm398_vm0 = vcmask 261120  }
  0xac   :  { %490 = vrot.lane.b32.xlu0 %v4258_v40, %s3717_s23  ;;  %417 = vmatpush.msra.mxu0 %v395_v41  ;;  %v4271_v43 = vld [vmem:[%s4658_s1 + $0xa0] sm:$0xff]  ;;  %v4288_v47 = vld [vmem:[%s4658_s1 + $0xa8] sm:$0xff]  ;;  %v392_v48 = vld [vmem:[%s4659_s2 + $0x38] sm:$0xff]  ;;  %s3718_s16 = smov 96  }
  0xad   :  { %486 = vrot.lane.b32.xlu1 %v4271_v43, %s3717_s23  ;;  %v393_v44 = vld [vmem:[%s4659_s2 + $0x40] sm:$0xff]  ;;  %797 = vmatpush.msra.mxu3 %v4288_v47  ;;  %v4299_v50 = vld [vmem:[%s4658_s1 + $0x98] sm:$0xff]  ;;  %v4304_v51 = vld [vmem:[%s4658_s1 + $0x90] sm:$0xff] }
  0xae   :  { %v386_v45 = vld [vmem:[%s4657_s0] sm:$0xff]  ;;  %418 = vmatpush.msra.mxu0 %v394_v42  ;;  %482 = vrot.lane.b32.xlu2 %v4304_v51, %s3717_s23  ;;  %v387_v52 = vld [vmem:[%s4657_s0 + $0x8] sm:$0xff]  ;;  %v4340_v57 = vld [vmem:[%s4658_s1 + $0x78] sm:$0xff] }
  0xaf   :  { %v388_v46 = vld [vmem:[%s4658_s1] sm:$0xff]  ;;  %798 = vmatpush.msra.mxu3 %v4271_v43  ;;  %v389_v53 = vld [vmem:[%s4658_s1 + $0x8] sm:$0xff]  ;;  %v4352_v58 = vld [vmem:[%s4658_s1 + $0x70] sm:$0xff] }
  0xb0   :  { %v4293_v49 = vadd.f32 %v388_v46, %v386_v45  ;;  %419 = vmatpush.msra.mxu0 %v393_v44  ;;  %v4326_v54 = vld [vmem:[%s4658_s1 + $0x88] sm:$0xff]  ;;  %v4328_v55 = vadd.f32 %v389_v53, %v387_v52  ;;  %v4334_v56 = vld [vmem:[%s4658_s1 + $0x80] sm:$0xff]  ;;  %v4372_v61 = vld [vmem:[%s4658_s1 + $0x58] sm:$0xff] }
  0xb1   :  { %799 = vmatpush.msra.mxu3 %v4299_v50  ;;  %v4360_v59 = vld [vmem:[%s4658_s1 + $0x68] sm:$0xff]  ;;  %v4366_v60 = vld [vmem:[%s4658_s1 + $0x60] sm:$0xff]  ;;  %v4386_v62 = vld [vmem:[%s4658_s1 + $0x50] sm:$0xff] }
  0xb2   :  { %420 = vmatpush.msra.mxu0 %v392_v48  ;;  %v4392_v63 = vld [vmem:[%s4658_s1 + $0x48] sm:$0xff]  ;;  %v4398_v0 = vld [vmem:[%s4658_s1 + $0x40] sm:$0xff]  ;;  %v3687_v2 = vld [vmem:[%s4659_s2 + $0x58] ss:$0 sm:$0xff] }
  0xb3   :  { %2801 = vmatmul.msk.f32.vlgmr.msra.gmra.mxu0 %vm398_vm0, %v4293_v49  ;;  %800 = vmatpush.msra.mxu3 %v4304_v51  ;;  %v4407_v3 = vld [vmem:[%s4658_s1 + $0x38] sm:$0xff] }
  0xb4   :  { %488 = vrot.lane.b32.xlu0 %v4288_v47, %s3717_s23 }
  0xb5   :  { %484 = vrot.lane.b32.xlu1 %v4299_v50, %s3717_s23  ;;  %801 = vmatpush.msra.mxu3 %v4326_v54 }
  0xb6   :  { %480 = vrot.lane.b32.xlu2 %v4326_v54, %s3717_s23 }
  0xb7   :  { %802 = vmatpush.msra.mxu3 %v4334_v56 }
  0xb9   :  { %803 = vmatpush.msra.mxu3 %v4340_v57 }
  0xbb   :  { %2802 = vmatmul.msk.f32.gmra.mxu0 %vm398_vm0, %v4328_v55  ;;  %804 = vmatpush.msra.mxu3 %v4352_v58 }
  0xbc   :  { %478 = vrot.lane.b32.xlu0 %v4334_v56, %s3717_s23 }
  0xbd   :  { %476 = vrot.lane.b32.xlu1 %v4340_v57, %s3717_s23  ;;  %805 = vmatpush.msra.mxu3 %v4360_v59 }
  0xbe   :  { %474 = vrot.lane.b32.xlu2 %v4352_v58, %s3717_s23 }
  0xbf   :  { %806 = vmatpush.msra.mxu3 %v4366_v60 }
  0xc1   :  { %807 = vmatpush.msra.mxu3 %v4372_v61 }
  0xc3   :  { %808 = vmatpush.msra.mxu3 %v4386_v62 }
  0xc4   :  { %472 = vrot.lane.b32.xlu0 %v4360_v59, %s3717_s23 }
  0xc5   :  { %470 = vrot.lane.b32.xlu1 %v4366_v60, %s3717_s23  ;;  %809 = vmatpush.msra.mxu3 %v4392_v63 }
  0xc7   :  { %810 = vmatpush.msra.mxu3 %v4398_v0 }
  0xc9   :  { %811 = vmatpush.msra.mxu3 %v4407_v3 }
  0xcc   :  { %468 = vrot.lane.b32.xlu0 %v4372_v61, %s3717_s23 }
 0x108   :  { %v483_v13 = vpop.permute.xlu2 %482 }
 0x110   :  { %v481_v16 = vpop.permute.xlu2 %480 }
 0x118   :  { %v475_v22 = vpop.permute.xlu2 %474 }
 0x11e   :  { %v491_v1 = vpop.permute.xlu0 %490 }
 0x11f   :  { %v487_v10 = vpop.permute.xlu1 %486 }
 0x126   :  { %v489_v6 = vpop.permute.xlu0 %488 }
 0x127   :  { %v485_v17 = vpop.permute.xlu1 %484 }
 0x12e   :  { %v479_v14 = vpop.permute.xlu0 %478 }
 0x12f   :  { %v477_v25 = vpop.permute.xlu1 %476 }
 0x130   :  { %v422_v4 = vpop.f32.mrf.mxu0 }
 0x131   :  { %v4410_v5 = vadd.f32 %v3687_v2, %v422_v4 }
 0x133   :  { %v522_v7 = vmul.f32 %v489_v6, %v4410_v5  ;;  %v518_v18 = vmul.f32 %v481_v16, %v4410_v5  ;;  %v520_v19 = vmul.f32 %v485_v17, %v4410_v5  ;;  %v516_v27 = vmul.f32 %v477_v25, %v4410_v5 }
 0x135   :  { %634 = vrot.lane.b32.xlu1 %v522_v7, %s3718_s16 }
 0x136   :  { %v473_v21 = vpop.permute.xlu0 %472 }
 0x137   :  { %v514_v24 = vmul.f32 %v473_v21, %v4410_v5  ;;  %v471_v29 = vpop.permute.xlu1 %470 }
 0x138   :  { %v425_v8 = vpop.f32.mrf.mxu0 }
 0x139   :  { %v4414_v9 = vadd.f32 %v3687_v2, %v425_v8 }
 0x13b   :  { %v523_v11 = vmul.f32 %v491_v1, %v4414_v9  ;;  %v521_v12 = vmul.f32 %v487_v10, %v4414_v9  ;;  %v519_v15 = vmul.f32 %v483_v13, %v4414_v9  ;;  %v517_v20 = vmul.f32 %v479_v14, %v4414_v9 }
 0x13c   :  { %v515_v23 = vmul.f32 %v475_v22, %v4414_v9  ;;  %v513_v30 = vmul.f32 %v471_v29, %v4414_v9 }
 0x13d   :  { %636 = vrot.lane.b32.xlu2 %v523_v11, %s3718_s16  ;;  %632 = vrot.lane.b32.xlu0 %v521_v12, %s3718_s16 }
 0x13e   :  { %464 = vrot.lane.b32.xlu1 %v4392_v63, %s3717_s23  ;;  %v469_v26 = vpop.permute.xlu0 %468 }
 0x13f   :  { %v512_v28 = vmul.f32 %v469_v26, %v4410_v5 }
 0x145   :  { %466 = vrot.lane.b32.xlu2 %v4386_v62, %s3717_s23  ;;  %462 = vrot.lane.b32.xlu0 %v4398_v0, %s3717_s23 }
 0x146   :  { %628 = vrot.lane.b32.xlu1 %v519_v15, %s3718_s16 }
 0x14d   :  { %630 = vrot.lane.b32.xlu2 %v520_v19, %s3718_s16  ;;  %626 = vrot.lane.b32.xlu0 %v518_v18, %s3718_s16 }
 0x14e   :  { %624 = vrot.lane.b32.xlu1 %v517_v20, %s3718_s16 }
 0x155   :  { %460 = vrot.lane.b32.xlu2 %v4407_v3, %s3717_s23  ;;  %620 = vrot.lane.b32.xlu0 %v515_v23, %s3718_s16  ;;  %s3719_s23 = smov 64  }
 0x156   :  { %618 = vrot.lane.b32.xlu1 %v514_v24, %s3718_s16 }
 0x15d   :  { %622 = vrot.lane.b32.xlu2 %v516_v27, %s3718_s16  ;;  %614 = vrot.lane.b32.xlu0 %v512_v28, %s3718_s16 }
 0x165   :  { %616 = vrot.lane.b32.xlu2 %v513_v30, %s3718_s16 }
 0x197   :  { %v637_v31 = vpop.permute.xlu2 %636 }
 0x198   :  { %2803 = vmatpush.xpose.msk.msra.mxu1 %vm398_vm0, %v637_v31 }
 0x19f   :  { %v467_v32 = vpop.permute.xlu2 %466 }
 0x1a0   :  { %v511_v33 = vmul.f32 %v467_v32, %v4414_v9 }
 0x1a2   :  { %612 = vrot.lane.b32.xlu1 %v511_v33, %s3718_s16 }
 0x1a7   :  { %v635_v34 = vpop.permute.xlu1 %634  ;;  %v631_v35 = vpop.permute.xlu2 %630 }
 0x1a8   :  { %2804 = vmatpush.xpose.msk.msra.mxu1 %vm398_vm0, %v635_v34 }
 0x1af   :  { %v633_v36 = vpop.permute.xlu0 %632  ;;  %v461_v37 = vpop.permute.xlu2 %460 }
 0x1b0   :  { %v465_v38 = vpop.permute.xlu1 %464  ;;  %v508_v39 = vmul.f32 %v461_v37, %v4410_v5  ;;  %2805 = vmatpush.xpose.msk.msra.mxu1 %vm398_vm0, %v633_v36 }
 0x1b1   :  { %v510_v41 = vmul.f32 %v465_v38, %v4410_v5 }
 0x1b2   :  { %606 = vrot.lane.b32.xlu1 %v508_v39, %s3718_s16 }
 0x1b3   :  { %610 = vrot.lane.b32.xlu2 %v510_v41, %s3718_s16 }
 0x1b4   :  { %2806 = vmatpush.xpose.msk.msra.mxu1 %vm398_vm0, %v631_v35 }
 0x1b7   :  { %v463_v42 = vpop.permute.xlu0 %462 }
 0x1b8   :  { %v509_v44 = vmul.f32 %v463_v42, %v4414_v9  ;;  %v629_v45 = vpop.permute.xlu1 %628  ;;  %v588_v42 = vld [vmem:[%s4659_s2] sm:$0xff] }
 0x1b9   :  { %2807 = vmatpush.xpose.msk.msra.mxu1 %vm398_vm0, %v629_v45 }
 0x1ba   :  { %550 = vrot.lane.b32.xlu1 %v4271_v43, %s3719_s23  ;;  %608 = vrot.lane.b32.xlu0 %v509_v44, %s3718_s16  ;;  %v623_v43 = vpop.permute.xlu2 %622 }
 0x1bb   :  { %554 = vrot.lane.b32.xlu2 %v4258_v40, %s3719_s23 }
 0x1bf   :  { %v627_v46 = vpop.permute.xlu0 %626 }
 0x1c0   :  { %2808 = vmatpush.xpose.msk.msra.mxu1 %vm398_vm0, %v627_v46  ;;  %v625_v48 = vpop.permute.xlu1 %624 }
 0x1c2   :  { %544 = vrot.lane.b32.xlu1 %v4326_v54, %s3719_s23  ;;  %552 = vrot.lane.b32.xlu0 %v4288_v47, %s3719_s23 }
 0x1c3   :  { %548 = vrot.lane.b32.xlu2 %v4299_v50, %s3719_s23  ;;  %v617_v50 = vpop.permute.xlu2 %616 }
 0x1c4   :  { %2809 = vmatpush.xpose.msk.msra.mxu1 %vm398_vm0, %v625_v48 }
 0x1c7   :  { %v621_v40 = vpop.permute.xlu0 %620 }
 0x1c8   :  { %2810 = vmatpush.xpose.msk.msra.mxu1 %vm398_vm0, %v623_v43  ;;  %v619_v47 = vpop.permute.xlu1 %618 }
 0x1ca   :  { %538 = vrot.lane.b32.xlu1 %v4352_v58, %s3719_s23  ;;  %546 = vrot.lane.b32.xlu0 %v4304_v51, %s3719_s23 }
 0x1cb   :  { %542 = vrot.lane.b32.xlu2 %v4334_v56, %s3719_s23 }
 0x1cc   :  { %2811 = vmatpush.xpose.msk.msra.mxu1 %vm398_vm0, %v621_v40  ;;  %v589_v40 = vld [vmem:[%s4659_s2 + $0x8] sm:$0xff] }
 0x1cf   :  { %v615_v51 = vpop.permute.xlu0 %614 }
 0x1d0   :  { %2812 = vmatpush.xpose.msk.msra.mxu1 %vm398_vm0, %v619_v47 }
 0x1d2   :  { %532 = vrot.lane.b32.xlu1 %v4372_v61, %s3719_s23  ;;  %540 = vrot.lane.b32.xlu0 %v4340_v57, %s3719_s23 }
 0x1d3   :  { %536 = vrot.lane.b32.xlu2 %v4360_v59, %s3719_s23 }
 0x1d4   :  { %2813 = vmatpush.xpose.msk.msra.mxu1 %vm398_vm0, %v617_v50 }
 0x1d8   :  { %2814 = vmatpush.xpose.msk.msra.mxu1 %vm398_vm0, %v615_v51 }
 0x1da   :  { %526 = vrot.lane.b32.xlu1 %v4398_v0, %s3719_s23  ;;  %534 = vrot.lane.b32.xlu0 %v4366_v60, %s3719_s23 }
 0x1db   :  { %530 = vrot.lane.b32.xlu2 %v4386_v62, %s3719_s23 }
 0x1e2   :  { %528 = vrot.lane.b32.xlu0 %v4392_v63, %s3719_s23 }
 0x1e3   :  { %524 = vrot.lane.b32.xlu2 %v4407_v3, %s3719_s23 }
 0x20d   :  { %v611_v53 = vpop.permute.xlu2 %610 }
 0x214   :  { %v613_v52 = vpop.permute.xlu1 %612 }
 0x215   :  { %2815 = vmatpush.xpose.msk.msra.mxu1 %vm398_vm0, %v613_v52  ;;  %v555_v54 = vpop.permute.xlu2 %554 }
 0x216   :  { %v587_v0 = vmul.f32 %v555_v54, %v4414_v9 }
 0x219   :  { %2816 = vmatpush.xpose.msk.msra.mxu1 %vm398_vm0, %v611_v53 }
 0x21d   :  { %v549_v57 = vpop.permute.xlu2 %548 }
 0x21e   :  { %v584_v60 = vmul.f32 %v549_v57, %v4410_v5 }
 0x224   :  { %v607_v56 = vpop.permute.xlu1 %606 }
 0x225   :  { %v543_v4 = vpop.permute.xlu2 %542 }
 0x226   :  { %v581_v15 = vmul.f32 %v543_v4, %v4414_v9 }
 0x22c   :  { %v551_v58 = vpop.permute.xlu1 %550  ;;  %v609_v59 = vpop.permute.xlu0 %608 }
 0x22d   :  { %v585_v61 = vmul.f32 %v551_v58, %v4414_v9  ;;  %2817 = vmatpush.xpose.msk.msra.mxu1 %vm398_vm0, %v609_v59  ;;  %v537_v12 = vpop.permute.xlu2 %536 }
 0x22e   :  { %v578_v16 = vmul.f32 %v537_v12, %v4410_v5 }
 0x22f   :  { %v3652_v62 = vpack.i.bf16 %v584_v60, %v585_v61 }
 0x231   :  { %3653 = vrot.lane.b32.xlu1 %v3652_v62, %s3719_s23  ;;  %2818 = vmatpush.xpose.msk.msra.mxu1 %vm398_vm0, %v607_v56 }
 0x234   :  { %2819 = vmatmul.msk.f32.vlgmr.msra.gmra.mxu1 %vm398_vm0, %v4410_v5  ;;  %v553_v63 = vpop.permute.xlu0 %552  ;;  %v545_v2 = vpop.permute.xlu1 %544 }
 0x235   :  { %v586_v1 = vmul.f32 %v553_v63, %v4410_v5  ;;  %v582_v7 = vmul.f32 %v545_v2, %v4410_v5  ;;  %v531_v25 = vpop.permute.xlu2 %530  ;;  %v825_v2 = vld [vmem:[%s4658_s1 + $0x28] sm:$0xff] }
 0x236   :  { %v575_v27 = vmul.f32 %v531_v25, %v4414_v9 }
 0x237   :  { %v3647_v3 = vpack.i.bf16 %v586_v1, %v587_v0  ;;  %v826_v1 = vld [vmem:[%s4658_s1 + $0x30] sm:$0xff] }
 0x238   :  { %847 = vmatpush.msrb.mxu0 %v826_v1 }
 0x239   :  { %3648 = vrot.lane.b32.xlu0 %v3647_v3, %s3719_s23 }
 0x23a   :  { %848 = vmatpush.msrb.mxu0 %v825_v2 }
 0x23c   :  { %2820 = vmatmul.msk.f32.gmra.mxu1 %vm398_vm0, %v4414_v9  ;;  %v547_v6 = vpop.permute.xlu0 %546  ;;  %v539_v11 = vpop.permute.xlu1 %538 }
 0x23d   :  { %v583_v8 = vmul.f32 %v547_v6, %v4414_v9  ;;  %v579_v13 = vmul.f32 %v539_v11, %v4414_v9  ;;  %v525_v31 = vpop.permute.xlu2 %524 }
 0x23e   :  { %v572_v33 = vmul.f32 %v525_v31, %v4410_v5 }
 0x23f   :  { %v3657_v10 = vpack.i.bf16 %v582_v7, %v583_v8  ;;  %v3667_v18 = vpack.i.bf16 %v578_v16, %v579_v13  ;;  %v824_v13 = vld [vmem:[%s4658_s1 + $0x20] sm:$0xff] }
 0x240   :  { %849 = vmatpush.msrb.mxu0 %v824_v13 }
 0x241   :  { %3658 = vrot.lane.b32.xlu2 %v3657_v10, %s3719_s23 }
 0x244   :  { %v541_v14 = vpop.permute.xlu0 %540  ;;  %v533_v20 = vpop.permute.xlu1 %532 }
 0x245   :  { %v580_v17 = vmul.f32 %v541_v14, %v4410_v5  ;;  %v576_v22 = vmul.f32 %v533_v20, %v4410_v5  ;;  %v823_v14 = vld [vmem:[%s4658_s1 + $0x18] sm:$0xff] }
 0x246   :  { %850 = vmatpush.msrb.mxu0 %v823_v14 }
 0x247   :  { %v3662_v19 = vpack.i.bf16 %v580_v17, %v581_v15 }
 0x249   :  { %3668 = vrot.lane.b32.xlu2 %v3667_v18, %s3719_s23  ;;  %3663 = vrot.lane.b32.xlu1 %v3662_v19, %s3719_s23 }
 0x24c   :  { %v535_v21 = vpop.permute.xlu0 %534  ;;  %v527_v30 = vpop.permute.xlu1 %526 }
 0x24d   :  { %v577_v23 = vmul.f32 %v535_v21, %v4414_v9  ;;  %v573_v32 = vmul.f32 %v527_v30, %v4414_v9 }
 0x24f   :  { %v3672_v24 = vpack.i.bf16 %v576_v22, %v577_v23  ;;  %v3682_v34 = vpack.i.bf16 %v572_v33, %v573_v32  ;;  %v3688_v23 = vld [vmem:[%s4658_s1 + $0x10] ss:$0 sm:$0xff]  ;;  %v3720_v32 = vmov 32.0  }
 0x251   :  { %3673 = vrot.lane.b32.xlu2 %v3672_v24, %s3719_s23 }
 0x254   :  { %v529_v26 = vpop.permute.xlu0 %528 }
 0x255   :  { %v574_v28 = vmul.f32 %v529_v26, %v4410_v5 }
 0x257   :  { %v3677_v29 = vpack.i.bf16 %v574_v28, %v575_v27 }
 0x259   :  { %3678 = vrot.lane.b32.xlu2 %v3677_v29, %s3719_s23 }
 0x261   :  { %3683 = vrot.lane.b32.xlu2 %v3682_v34, %s3719_s23 }
 0x29b   :  { %v3659_v35 = vpop.permute.xlu2 %3658 }
 0x29c   :  { %v3660_v46 = vunpack.i.l.bf16 %v3659_v35  ;;  %v3661_v43 = vunpack.i.h.bf16 %v3659_v35 }
 0x2a3   :  { %v3669_v36 = vpop.permute.xlu2 %3668  ;;  %v3654_v39 = vpop.permute.xlu1 %3653 }
 0x2a4   :  { %v3655_v44 = vunpack.i.l.bf16 %v3654_v39  ;;  %v3656_v5 = vunpack.i.h.bf16 %v3654_v39  ;;  %v3670_v56 = vunpack.i.l.bf16 %v3669_v36  ;;  %v3671_v57 = vunpack.i.h.bf16 %v3669_v36 }
 0x2ab   :  { %v3649_v37 = vpop.permute.xlu0 %3648  ;;  %v3674_v48 = vpop.permute.xlu2 %3673 }
 0x2ac   :  { %v3650_v38 = vunpack.i.l.bf16 %v3649_v37  ;;  %v3651_v41 = vunpack.i.h.bf16 %v3649_v37  ;;  %v3675_v58 = vunpack.i.l.bf16 %v3674_v48  ;;  %v3676_v59 = vunpack.i.h.bf16 %v3674_v48 }
 0x2ae   :  { %773 = vmatpush.msra.mxu2 %v3650_v38 }
 0x2b0   :  { %774 = vmatpush.msra.mxu2 %v3651_v41 }
 0x2b1   :  { %v693_v45 = vpop.f32.mrf.mxu1 }
 0x2b2   :  { %v694_v9 = vadd.f32 %v693_v45, %v588_v42  ;;  %775 = vmatpush.msra.mxu2 %v3655_v44 }
 0x2b3   :  { %v3679_v54 = vpop.permute.xlu2 %3678 }
 0x2b4   :  { %699 = vmax.xlane.f32.xlu0 %v694_v9  ;;  %776 = vmatpush.msra.mxu2 %v3656_v5  ;;  %v3680_v60 = vunpack.i.l.bf16 %v3679_v54  ;;  %v3681_v62 = vunpack.i.h.bf16 %v3679_v54 }
 0x2b6   :  { %777 = vmatpush.msra.mxu2 %v3660_v46 }
 0x2b8   :  { %778 = vmatpush.msra.mxu2 %v3661_v43 }
 0x2b9   :  { %v696_v47 = vpop.f32.mrf.mxu1 }
 0x2ba   :  { %v697_v50 = vadd.f32 %v696_v47, %v589_v40 }
 0x2bb   :  { %v3664_v51 = vpop.permute.xlu1 %3663  ;;  %v3684_v61 = vpop.permute.xlu2 %3683 }
 0x2bc   :  { %701 = vmax.xlane.f32.xlu1 %v697_v50  ;;  %v3665_v52 = vunpack.i.l.bf16 %v3664_v51  ;;  %v3666_v53 = vunpack.i.h.bf16 %v3664_v51  ;;  %v3685_v63 = vunpack.i.l.bf16 %v3684_v61  ;;  %v3686_v0 = vunpack.i.h.bf16 %v3684_v61  ;;  %v3689_v61 = vld [vmem:[%s4658_s1 + $0x11] ss:$0 sm:$0xff] }
 0x2be   :  { %779 = vmatpush.msra.mxu2 %v3665_v52 }
 0x2c0   :  { %780 = vmatpush.msra.mxu2 %v3666_v53 }
 0x2c2   :  { %781 = vmatpush.msra.mxu2 %v3670_v56 }
 0x2c4   :  { %782 = vmatpush.msra.mxu2 %v3671_v57 }
 0x2c6   :  { %783 = vmatpush.msra.mxu2 %v3675_v58 }
 0x2c8   :  { %784 = vmatpush.msra.mxu2 %v3676_v59 }
 0x2ca   :  { %785 = vmatpush.msra.mxu2 %v3680_v60 }
 0x2cc   :  { %786 = vmatpush.msra.mxu2 %v3681_v62 }
 0x2ce   :  { %787 = vmatpush.msra.mxu2 %v3685_v63 }
 0x2d0   :  { %788 = vmatpush.msra.mxu2 %v3686_v0  ;;  %v3690_v0 = vld [vmem:[%s4658_s1 + $0x12] ss:$0 sm:$0xff] }
 0x327   :  { %v700_v3 = vpop.xlane.xlu0 %699 }
 0x328   :  { %v703_v4 = vsub.f32 %v694_v9, %v700_v3 }
 0x32a   :  { %v705_v6 = vmul.f32 1.442695, %v703_v4 }
 0x32c   :  { %3691 = vpow2.f32 %v705_v6 }
 0x32f   :  { %v702_v7 = vpop.xlane.xlu1 %701 }
 0x330   :  { %v704_v8 = vsub.f32 %v697_v50, %v702_v7 }
 0x332   :  { %v3692_v10 = vpop.eup %3691  ;;  %v707_v11 = vmul.f32 1.442695, %v704_v8 }
 0x333   :  { %789 = vmatmul.f32.vlgmr.msra.gmra.mxu2 %v3692_v10  ;;  %812 = vmatmul.f32.vlgmr.msra.gmra.mxu3 %v3692_v10 }
 0x334   :  { %3693 = vpow2.f32 %v707_v11 }
 0x33a   :  { %v3694_v12 = vpop.eup %3693 }
 0x33b   :  { %792 = vmatmul.f32.gmra.mxu2 %v3694_v12  ;;  %815 = vmatmul.f32.gmra.mxu3 %v3694_v12 }
 0x3b6   :  { %v813_v15 = vpop.f32.mrf.mxu3  ;;  %v790_v16 = vpop.f32.mrf.mxu2 }
 0x3b7   :  { %3695 = vrcp.f32 %v813_v15 }
 0x3bd   :  { %v3696_v17 = vpop.eup %3695 }
 0x3be   :  { %v816_v18 = vpop.f32.mrf.mxu3  ;;  %v821_v19 = vmul.f32 %v3696_v17, %v790_v16  ;;  %v793_v21 = vpop.f32.mrf.mxu2 }
 0x3bf   :  { %3697 = vrcp.f32 %v816_v18 }
 0x3c0   :  { %2821 = vmatmul.msk.f32.vlgmr.msrb.gmra.mxu0 %vm398_vm0, %v821_v19  ;;  %3699 = vrcp.f32 %v3720_v32 }
 0x3c5   :  { %v3698_v20 = vpop.eup %3697 }
 0x3c6   :  { %v822_v22 = vmul.f32 %v3698_v20, %v793_v21  ;;  %v3700_v33 = vpop.eup %3699 }
 0x3c7   :  { %v869_v34 = vmul.f32 32.0, %v3700_v33  ;;  %vm873_vm1 = vweird.f32 %v3700_v33 }
 0x3c8   :  { %2822 = vmatmul.msk.f32.gmra.mxu0 %vm398_vm0, %v822_v22 }
 0x3c9   :  { %v870_v35 = vsub.f32 1.0, %v869_v34 }
 0x3cb   :  { %v871_v36 = vmul.f32 %v3700_v33, %v870_v35 }
 0x3cd   :  { %v872_v37 = vadd.f32 %v3700_v33, %v871_v36 }
 0x3cf   :  { %v4557_v38 = vsel %vm873_vm1, %v3700_v33, %v872_v37 }
 0x43d   :  { %v852_v24 = vpop.f32.mrf.mxu0 }
 0x43e   :  { %v853_v25 = vadd.f32 %v3688_v23, %v852_v24 }
 0x440   :  { %v858_v26 = vadd.f32 %v853_v25, %v4293_v49 }
 0x442   :  { %v862_v27 = vsel %vm398_vm0, %v858_v26, 0.0 }
 0x443   :  { %863 = vadd.xlane.f32.xlu2 %v862_v27 }
 0x445   :  { %v855_v28 = vpop.f32.mrf.mxu0 }
 0x446   :  { %v856_v29 = vadd.f32 %v3688_v23, %v855_v28 }
 0x448   :  { %v859_v30 = vadd.f32 %v856_v29, %v4328_v55 }
 0x44a   :  { %v865_v31 = vsel %vm398_vm0, %v859_v30, 0.0 }
 0x44b   :  { %866 = vadd.xlane.f32.xlu0 %v865_v31 }
 0x4b6   :  { %v864_v49 = vpop.xlane.xlu2 %863 }
 0x4b7   :  { %v875_v39 = vmul.f32 %v4557_v38, %v864_v49 }
 0x4b9   :  { %v877_v41 = vsub.f32 %v858_v26, %v875_v39 }
 0x4bb   :  { %v879_v42 = vmul.f32 %v877_v41, %v877_v41 }
 0x4bd   :  { %v881_v55 = vsel %vm398_vm0, %v879_v42, 0.0 }
 0x4be   :  { %882 = vadd.xlane.f32.xlu0 %v881_v55  ;;  %v867_v44 = vpop.xlane.xlu0 %866 }
 0x4bf   :  { %v876_v45 = vmul.f32 %v4557_v38, %v867_v44 }
 0x4c1   :  { %v878_v9 = vsub.f32 %v859_v30, %v876_v45 }
 0x4c3   :  { %v880_v5 = vmul.f32 %v878_v9, %v878_v9 }
 0x4c5   :  { %v884_v46 = vsel %vm398_vm0, %v880_v5, 0.0 }
 0x4c6   :  { %885 = vadd.xlane.f32.xlu1 %v884_v46 }
 0x531   :  { %v883_v48 = vpop.xlane.xlu0 %882 }
 0x532   :  { %v887_v43 = vmul.f32 %v883_v48, %v4557_v38 }
 0x534   :  { %v889_v40 = vadd.f32 1e-05, %v887_v43 }
 0x536   :  { %3701 = vrsqrt.f32 %v889_v40  ;;  %vm897_vm3 = vweird.f32 %v889_v40 }
 0x539   :  { %v886_v47 = vpop.xlane.xlu1 %885 }
 0x53a   :  { %v888_v50 = vmul.f32 %v886_v47, %v4557_v38 }
 0x53c   :  { %v3702_v51 = vpop.eup %3701  ;;  %v890_v52 = vadd.f32 1e-05, %v888_v50 }
 0x53d   :  { %v892_v53 = vmul.f32 %v3702_v51, %v889_v40  ;;  %vm898_vm2 = vweird.f32 %v3702_v51 }
 0x53e   :  { %3703 = vrsqrt.f32 %v890_v52  ;;  %vm899_vm4 = vmor %vm897_vm3, %vm898_vm2  ;;  %vm907_vm6 = vweird.f32 %v890_v52 }
 0x53f   :  { %v893_v54 = vmul.f32 %v3702_v51, %v892_v53 }
 0x541   :  { %v894_v56 = vmul.f32 0.5, %v893_v54 }
 0x543   :  { %v895_v57 = vsub.f32 1.5, %v894_v56 }
 0x544   :  { %v3704_v58 = vpop.eup %3703 }
 0x545   :  { %v896_v59 = vmul.f32 %v3702_v51, %v895_v57  ;;  %v902_v60 = vmul.f32 %v3704_v58, %v890_v52  ;;  %vm908_vm5 = vweird.f32 %v3704_v58 }
 0x546   :  { %vm909_vm7 = vmor %vm907_vm6, %vm908_vm5 }
 0x547   :  { %v900_v62 = vsel %vm899_vm4, %v3702_v51, %v896_v59  ;;  %v903_v63 = vmul.f32 %v3704_v58, %v902_v60 }
 0x548   :  { %v911_v1 = vmul.f32 %v900_v62, %v877_v41 }
 0x549   :  { %v904_v2 = vmul.f32 0.5, %v903_v63 }
 0x54a   :  { %v914_v3 = vmul.f32 %v3689_v61, %v911_v1 }
 0x54b   :  { %v905_v4 = vsub.f32 1.5, %v904_v2 }
 0x54c   :  { %v4571_v6 = vadd.f32 %v3690_v0, %v914_v3 }
 0x54d   :  { %v906_v7 = vmul.f32 %v3704_v58, %v905_v4 }
 0x54f   :  { %v910_v8 = vsel %vm909_vm7, %v3704_v58, %v906_v7 }
 0x550   :  { %v912_v10 = vmul.f32 %v910_v8, %v878_v9 }
 0x552   :  { %v915_v11 = vmul.f32 %v3689_v61, %v912_v10 }
 0x554   :  { %v4573_v12 = vadd.f32 %v3690_v0, %v915_v11 }
 0x555   :  { %3713 = dma.done.wait [#allocation4], 5120 }
 0x556   :  { %3714 = vsyncadd [#allocation4], 4294962176 }
 0x557   :  { %3715 = dma.done.wait [#allocation4 + $0x1], 16384 }
 0x558   :  { %3716 = vsyncadd [#allocation4 + $0x1], 4294950912  ;;  %v2889_v13 = vld [vmem:[#allocation2 + $0x80] sm:$0xf]  ;;  %v3499_v15 = vld [vmem:[#allocation2 + $0x84] sm:$0xf]  ;;  %v4577_v49 = vpack.c.bf16 %v4573_v12, %v4571_v6 }
 0x559   :  { %v3507_v14 = vld [vmem:[#allocation2 + $0xbc] sm:$0xf0]  ;;  %v2891_v17 = vld [vmem:[#allocation2 + $0xc0] sm:$0xf0]  ;;  %v2897_v18 = vld [vmem:[#allocation2 + $0x88] sm:$0xf] }
 0x55a   :  { %v2890_v16 = vor.u32 %v3507_v14, %v2889_v13  ;;  %v3508_v19 = vld [vmem:[#allocation2 + $0xc4] sm:$0xf0]  ;;  %v2894_v20 = vor.u32 %v3499_v15, %v2891_v17  ;;  %v2825_v22 = vld [vmem:[#allocation2] sm:$0xf]  ;;  %v3483_v24 = vld [vmem:[#allocation2 + $0x4] sm:$0xf] }
 0x55b   :  { %v2898_v21 = vor.u32 %v3508_v19, %v2897_v18  ;;  %v3491_v23 = vld [vmem:[#allocation2 + $0x3c] sm:$0xf0]  ;;  %v2827_v26 = vld [vmem:[#allocation2 + $0x40] sm:$0xf0]  ;;  %v2833_v27 = vld [vmem:[#allocation2 + $0x8] sm:$0xf] }
 0x55c   :  { %1169 = vmatpush.bf16.msra.mxu0 %v2890_v16  ;;  %v2826_v25 = vor.u32 %v3491_v23, %v2825_v22  ;;  %v3492_v28 = vld [vmem:[#allocation2 + $0x44] sm:$0xf0]  ;;  %1183 = vmatpush.bf16.msrb.mxu2 %v2894_v20  ;;  %v2830_v29 = vor.u32 %v3483_v24, %v2827_v26  ;;  %v3500_v31 = vld [vmem:[#allocation2 + $0x8c] sm:$0xf]  ;;  %v2905_v33 = vld [vmem:[#allocation2 + $0x90] sm:$0xf] }
 0x55d   :  { %1197 = vmatpush.bf16.msrb.mxu3 %v2898_v21  ;;  %v2834_v30 = vor.u32 %v3492_v28, %v2833_v27  ;;  %v2899_v32 = vld [vmem:[#allocation2 + $0xc8] sm:$0xf0]  ;;  %v3509_v35 = vld [vmem:[#allocation2 + $0xcc] sm:$0xf0]  ;;  %v3501_v36 = vld [vmem:[#allocation2 + $0x94] sm:$0xf] }
 0x55e   :  { %v2902_v34 = vor.u32 %v3500_v31, %v2899_v32  ;;  %v2907_v37 = vld [vmem:[#allocation2 + $0xd0] sm:$0xf0]  ;;  %v2906_v39 = vor.u32 %v3509_v35, %v2905_v33  ;;  %v3484_v42 = vld [vmem:[#allocation2 + $0xc] sm:$0xf]  ;;  %v2841_v44 = vld [vmem:[#allocation2 + $0x10] sm:$0xf] }
 0x55f   :  { %v2910_v41 = vor.u32 %v3501_v36, %v2907_v37  ;;  %v2835_v55 = vld [vmem:[#allocation2 + $0x48] sm:$0xf0]  ;;  %v3493_v45 = vld [vmem:[#allocation2 + $0x4c] sm:$0xf0]  ;;  %v3485_v9 = vld [vmem:[#allocation2 + $0x14] sm:$0xf] }
 0x560   :  { %1170 = vmatpush.bf16.msra.mxu0 %v2826_v25  ;;  %v2843_v5 = vld [vmem:[#allocation2 + $0x50] sm:$0xf0]  ;;  %1184 = vmatpush.bf16.msrb.mxu2 %v2830_v29  ;;  %v2913_v46 = vld [vmem:[#allocation2 + $0x98] sm:$0xf]  ;;  %v3502_v43 = vld [vmem:[#allocation2 + $0x9c] sm:$0xf]  ;;  %v2838_v40 = vor.u32 %v3484_v42, %v2835_v55  ;;  %v2842_v47 = vor.u32 %v3493_v45, %v2841_v44 }
 0x561   :  { %1198 = vmatpush.bf16.msrb.mxu3 %v2834_v30  ;;  %v3510_v48 = vld [vmem:[#allocation2 + $0xd4] sm:$0xf0]  ;;  %v2915_v50 = vld [vmem:[#allocation2 + $0xd8] sm:$0xf0]  ;;  %v2921_v51 = vld [vmem:[#allocation2 + $0xa0] sm:$0xf]  ;;  %v2846_v53 = vor.u32 %v3485_v9, %v2843_v5 }
 0x562   :  { %v3511_v52 = vld [vmem:[#allocation2 + $0xdc] sm:$0xf0]  ;;  %v2914_v54 = vor.u32 %v3510_v48, %v2913_v46  ;;  %v2918_v56 = vor.u32 %v3502_v43, %v2915_v50  ;;  %v3503_v57 = vld [vmem:[#allocation2 + $0xa4] sm:$0xf]  ;;  %v2849_v59 = vld [vmem:[#allocation2 + $0x18] sm:$0xf] }
 0x563   :  { %2951 = vmatmul.msk.bf16.vlgmr.msra.gmra.mxu0 %vm398_vm0, %v4577_v49  ;;  %v2923_v58 = vld [vmem:[#allocation2 + $0xe0] sm:$0xf0]  ;;  %2952 = vmatmul.msk.bf16.vlgmr.msrb.gmra.mxu2 %vm398_vm0, %v4577_v49  ;;  %v2922_v60 = vor.u32 %v3511_v52, %v2921_v51  ;;  %v3494_v62 = vld [vmem:[#allocation2 + $0x54] sm:$0xf0]  ;;  %v3486_v63 = vld [vmem:[#allocation2 + $0x1c] sm:$0xf] }
 0x564   :  { %1211 = vmatpush.bf16.msrb.mxu0 %v2902_v34  ;;  %1225 = vmatpush.bf16.msra.mxu2 %v2906_v39  ;;  %v2926_v61 = vor.u32 %v3503_v57, %v2923_v58  ;;  %v2851_v0 = vld [vmem:[#allocation2 + $0x58] sm:$0xf0]  ;;  %v2857_v2 = vld [vmem:[#allocation2 + $0x20] sm:$0xf]  ;;  %v3487_v4 = vld [vmem:[#allocation2 + $0x24] sm:$0xf]  ;;  %v2850_v8 = vor.u32 %v3494_v62, %v2849_v59 }
 0x565   :  { %1239 = vmatpush.bf16.msra.mxu3 %v2910_v41  ;;  %1267 = vmatpush.bf16.msrb.mxu1 %v2918_v56  ;;  %v2854_v1 = vor.u32 %v3486_v63, %v2851_v0  ;;  %v3495_v3 = vld [vmem:[#allocation2 + $0x5c] sm:$0xf0]  ;;  %v2859_v7 = vld [vmem:[#allocation2 + $0x60] sm:$0xf0]  ;;  %v3504_v10 = vld [vmem:[#allocation2 + $0xac] sm:$0xf] }
 0x566   :  { %2953 = vmatmul.msk.bf16.vlgmr.msrb.gmra.mxu3 %vm398_vm0, %v4577_v49  ;;  %v2931_v11 = vld [vmem:[#allocation2 + $0xe8] sm:$0xf0]  ;;  %v2858_v13 = vor.u32 %v3495_v3, %v2857_v2  ;;  %v2862_v14 = vor.u32 %v3487_v4, %v2859_v7  ;;  %v2929_v19 = vld [vmem:[#allocation2 + $0xa8] sm:$0xf]  ;;  %v2937_v21 = vld [vmem:[#allocation2 + $0xb0] sm:$0xf] }
 0x567   :  { %v2934_v15 = vor.u32 %v3504_v10, %v2931_v11  ;;  %v3488_v16 = vld [vmem:[#allocation2 + $0x2c] sm:$0xf]  ;;  %v3512_v20 = vld [vmem:[#allocation2 + $0xe4] sm:$0xf0]  ;;  %v3513_v22 = vld [vmem:[#allocation2 + $0xec] sm:$0xf0] }
 0x568   :  { %1212 = vmatpush.bf16.msrb.mxu0 %v2838_v40  ;;  %1226 = vmatpush.bf16.msra.mxu2 %v2842_v47  ;;  %v2867_v17 = vld [vmem:[#allocation2 + $0x68] sm:$0xf0]  ;;  %v3505_v23 = vld [vmem:[#allocation2 + $0xb4] sm:$0xf]  ;;  %v2930_v25 = vor.u32 %v3512_v20, %v2929_v19  ;;  %v2938_v26 = vor.u32 %v3513_v22, %v2937_v21  ;;  %v2865_v27 = vld [vmem:[#allocation2 + $0x28] sm:$0xf] }
 0x569   :  { %1240 = vmatpush.bf16.msra.mxu3 %v2846_v53  ;;  %1268 = vmatpush.bf16.msrb.mxu1 %v2854_v1  ;;  %v2870_v18 = vor.u32 %v3488_v16, %v2867_v17  ;;  %v2939_v24 = vld [vmem:[#allocation2 + $0xf0] sm:$0xf0]  ;;  %v3496_v29 = vld [vmem:[#allocation2 + $0x64] sm:$0xf0]  ;;  %v2873_v30 = vld [vmem:[#allocation2 + $0x30] sm:$0xf] }
 0x56a   :  { %v2942_v28 = vor.u32 %v3505_v23, %v2939_v24  ;;  %v3497_v31 = vld [vmem:[#allocation2 + $0x6c] sm:$0xf0]  ;;  %v3489_v32 = vld [vmem:[#allocation2 + $0x34] sm:$0xf]  ;;  %v3506_v34 = vld [vmem:[#allocation2 + $0xbc] sm:$0xf]  ;;  %v2866_v35 = vor.u32 %v3496_v29, %v2865_v27 }
 0x56b   :  { %v2875_v33 = vld [vmem:[#allocation2 + $0x70] sm:$0xf0]  ;;  %v2874_v36 = vor.u32 %v3497_v31, %v2873_v30  ;;  %v2947_v37 = vld [vmem:[#allocation2 + $0xf8] sm:$0xf0]  ;;  %v2945_v45 = vld [vmem:[#allocation2 + $0xb8] sm:$0xf] }
 0x56c   :  { %1253 = vmatpush.bf16.msra.mxu0 %v2914_v54  ;;  %1281 = vmatpush.bf16.msrb.mxu2 %v2922_v60  ;;  %v2878_v39 = vor.u32 %v3489_v32, %v2875_v33  ;;  %v2950_v41 = vor.u32 %v3506_v34, %v2947_v37  ;;  %v3490_v42 = vld [vmem:[#allocation2 + $0x3c] sm:$0xf]  ;;  %v3514_v9 = vld [vmem:[#allocation2 + $0xf4] sm:$0xf0]  ;;  %v3522_v43 = vld [vmem:[#allocation3 + $0x48] sm:$0xff] }
 0x56d   :  { %1295 = vmatpush.bf16.msrb.mxu3 %v2926_v61  ;;  %1323 = vmatpush.bf16.msra.mxu1 %v2934_v15  ;;  %v2883_v55 = vld [vmem:[#allocation2 + $0x78] sm:$0xf0]  ;;  %v2946_v5 = vor.u32 %v3514_v9, %v2945_v45  ;;  %v2881_v46 = vld [vmem:[#allocation2 + $0x38] sm:$0xf]  ;;  %v3530_v40 = vld [vmem:[#allocation3 + $0x60] sm:$0xff] }
 0x56e   :  { %2958 = vmatmul.msk.bf16.vlgmr.msrb.gmra.mxu1 %vm398_vm0, %v4577_v49  ;;  %v2886_v44 = vor.u32 %v3490_v42, %v2883_v55  ;;  %v3498_v48 = vld [vmem:[#allocation2 + $0x74] sm:$0xf0]  ;;  %v3521_v50 = vld [vmem:[#allocation3 + $0x330] sm:$0xff]  ;;  %v3529_v51 = vld [vmem:[#allocation3 + $0x108] sm:$0xff] }
 0x56f   :  { %v2882_v47 = vor.u32 %v3498_v48, %v2881_v46  ;;  %v3546_v52 = vld [vmem:[#allocation3 + $0x280] sm:$0xff]  ;;  %v3520_v54 = vld [vmem:[#allocation3 + $0x368] sm:$0xff]  ;;  %v3528_v56 = vld [vmem:[#allocation3 + $0x150] sm:$0xff] }
 0x570   :  { %1254 = vmatpush.bf16.msra.mxu0 %v2850_v8  ;;  %1282 = vmatpush.bf16.msrb.mxu2 %v2858_v13  ;;  %v3545_v53 = vld [vmem:[#allocation3 + $0x1c0] sm:$0xff]  ;;  %v3519_v58 = vld [vmem:[#allocation3 + $0x50] sm:$0xff]  ;;  %v3538_v60 = vld [vmem:[#allocation3 + $0x168] sm:$0xff] }
 0x571   :  { %1296 = vmatpush.bf16.msrb.mxu3 %v2862_v14  ;;  %1324 = vmatpush.bf16.msra.mxu1 %v2870_v18  ;;  %v3544_v57 = vld [vmem:[#allocation3 + $0xc0] sm:$0xff]  ;;  %v3518_v61 = vld [vmem:[#allocation3 + $0x18] sm:$0xff]  ;;  %v3542_v3 = vld [vmem:[#allocation3 + $0x28] sm:$0xff] }
 0x572   :  { %v3527_v59 = vld [vmem:[#allocation3 + $0x320] sm:$0xff]  ;;  %v3526_v62 = vld [vmem:[#allocation3 + $0x98] sm:$0xff]  ;;  %v3536_v4 = vld [vmem:[#allocation3 + $0x1a8] sm:$0xff] }
 0x573   :  { %2954 = vmatmul.msk.bf16.vlgmr.msrb.gmra.mxu0 %vm398_vm0, %v4577_v49  ;;  %2955 = vmatmul.msk.bf16.vlgmr.msra.gmra.mxu2 %vm398_vm0, %v4577_v49  ;;  %v3543_v63 = vld [vmem:[#allocation3 + $0x138] sm:$0xff]  ;;  %v3516_v7 = vld [vmem:[#allocation3 + $0x3b0] sm:$0xff]  ;;  %v3535_v11 = vld [vmem:[#allocation3 + $0x80] sm:$0xff] }
 0x574   :  { %1309 = vmatpush.bf16.msrb.mxu0 %v2930_v25  ;;  %1337 = vmatpush.bf16.msra.mxu2 %v2938_v26  ;;  %v3537_v0 = vld [vmem:[#allocation3 + $0x1b8] sm:$0xff]  ;;  %v3524_v8 = vld [vmem:[#allocation3 + $0x110] sm:$0xff]  ;;  %v3554_v14 = vld [vmem:[#allocation3 + $0x128] sm:$0xff] }
 0x575   :  { %1379 = vmatpush.bf16.msrb.mxu1 %v2950_v41  ;;  %v3517_v1 = vld [vmem:[#allocation3 + $0xd8] sm:$0xff]  ;;  %v3541_v10 = vld [vmem:[#allocation3 + $0x290] sm:$0xff]  ;;  %v3523_v15 = vld [vmem:[#allocation3 + $0x380] sm:$0xff] }
 0x576   :  { %2956 = vmatmul.msk.bf16.vlgmr.msra.gmra.mxu3 %vm398_vm0, %v4577_v49  ;;  %v3525_v2 = vld [vmem:[#allocation3 + $0x118] sm:$0xff]  ;;  %v3515_v13 = vld [vmem:[#allocation3 + $0x2b0] sm:$0xff]  ;;  %v3534_v18 = vld [vmem:[#allocation3 + $0x340] sm:$0xff] }
 0x577   :  { %1351 = vmatpush.bf16.msra.mxu3 %v2942_v28  ;;  %v3562_v16 = vld [vmem:[#allocation3 + $0x10] sm:$0xff]  ;;  %v3540_v17 = vld [vmem:[#allocation3 + $0x2f8] sm:$0xff]  ;;  %v3553_v19 = vld [vmem:[#allocation3 + $0x8] sm:$0xff] }
 0x578   :  { %1310 = vmatpush.bf16.msrb.mxu0 %v2866_v35  ;;  %1338 = vmatpush.bf16.msra.mxu2 %v2874_v36  ;;  %v3561_v20 = vld [vmem:[#allocation3 + $0x1f0] sm:$0xff]  ;;  %v3533_v21 = vld [vmem:[#allocation3 + $0x338] sm:$0xff]  ;;  %v3532_v23 = vld [vmem:[#allocation3 + $0x388] sm:$0xff] }
 0x579   :  { %1380 = vmatpush.bf16.msrb.mxu1 %v2886_v44  ;;  %v3552_v22 = vld [vmem:[#allocation3 + $0x3f8] sm:$0xff]  ;;  %v3531_v25 = vld [vmem:[#allocation3 + $0x2e0] sm:$0xff]  ;;  %v3570_v26 = vld [vmem:[#allocation3 + $0x2f0] sm:$0xff] }
 0x57a   :  { %v3551_v24 = vld [vmem:[#allocation3 + $0x218] sm:$0xff]  ;;  %v3569_v27 = vld [vmem:[#allocation3 + $0x88] sm:$0xff]  ;;  %v3568_v28 = vld [vmem:[#allocation3 + $0xd0] sm:$0xff] }
 0x57b   :  { %1352 = vmatpush.bf16.msra.mxu3 %v2878_v39  ;;  %v3539_v29 = vld [vmem:[#allocation3 + $0x3e8] sm:$0xff]  ;;  %v3550_v30 = vld [vmem:[#allocation3 + $0x3e0] sm:$0xff]  ;;  %v3559_v32 = vld [vmem:[#allocation3 + $0xb0] sm:$0xff] }
 0x57c   :  { %v3578_v31 = vld [vmem:[#allocation3 + $0x2a8] sm:$0xff]  ;;  %v3549_v34 = vld [vmem:[#allocation3 + $0x158] sm:$0xff]  ;;  %v3577_v35 = vld [vmem:[#allocation3 + $0x140] sm:$0xff] }
 0x57d   :  { %v3567_v33 = vld [vmem:[#allocation3 + $0x208] sm:$0xff]  ;;  %v3558_v36 = vld [vmem:[#allocation3 + $0x2c0] sm:$0xff]  ;;  %v3576_v41 = vld [vmem:[#allocation3 + $0x30] sm:$0xff] }
 0x57e   :  { %2962 = vmatmul.msk.bf16.vlgmr.msra.gmra.mxu1 %vm398_vm0, %v4577_v49  ;;  %v3566_v37 = vld [vmem:[#allocation3 + $0x3a0] sm:$0xff]  ;;  %v3565_v55 = vld [vmem:[#allocation3 + $0x90] sm:$0xff]  ;;  %v3575_v45 = vld [vmem:[#allocation3 + $0x1d8] sm:$0xff] }
 0x57f   :  { %2503 = vmatpush.bf16.msra.mxu1 %v3546_v52  ;;  %v3548_v39 = vld [vmem:[#allocation3 + $0x3c0] sm:$0xff]  ;;  %v3556_v9 = vld [vmem:[#allocation3 + $0x3f0] sm:$0xff]  ;;  %v3574_v46 = vld [vmem:[#allocation3 + $0x188] sm:$0xff] }
 0x580   :  { %v3557_v42 = vld [vmem:[#allocation3 + $0xa0] sm:$0xff] }
 0x581   :  { %v3547_v44 = vld [vmem:[#allocation3 + $0x100] sm:$0xff] }
 0x582   :  { %v3555_v48 = vld [vmem:[#allocation3 + $0x2a0] sm:$0xff] }
 0x583   :  { %2957 = vmatmul.msk.bf16.vlgmr.msra.gmra.mxu0 %vm398_vm0, %v4577_v49  ;;  %2959 = vmatmul.msk.bf16.vlgmr.msrb.gmra.mxu2 %vm398_vm0, %v4577_v49 }
 0x584   :  { %1365 = vmatpush.bf16.msra.mxu0 %v2946_v5  ;;  %2461 = vmatpush.bf16.msrb.mxu2 %v3522_v43  ;;  %v3564_v5 = vld [vmem:[#allocation3 + $0x240] sm:$0xff]  ;;  %v3563_v43 = vld [vmem:[#allocation3 + $0x230] sm:$0xff] }
 0x585   :  { %2504 = vmatpush.bf16.msra.mxu1 %v3545_v53 }
 0x586   :  { %2960 = vmatmul.msk.bf16.vlgmr.msrb.gmra.mxu3 %vm398_vm0, %v4577_v49 }
 0x587   :  { %2475 = vmatpush.bf16.msrb.mxu3 %v3530_v40  ;;  %v3573_v40 = vld [vmem:[#allocation3 + $0x350] sm:$0xff] }
 0x588   :  { %1366 = vmatpush.bf16.msra.mxu0 %v2882_v47  ;;  %2462 = vmatpush.bf16.msrb.mxu2 %v3521_v50  ;;  %v3572_v47 = vld [vmem:[#allocation3 + $0x268] sm:$0xff]  ;;  %v960_v50 = vld [vmem:[#allocation2 + $0x100] sm:$0x11] }
 0x589   :  { %2505 = vmatpush.bf16.msra.mxu1 %v3544_v57  ;;  %v968_v52 = vunpack.c.l.bf16 %v960_v50 }
 0x58b   :  { %2476 = vmatpush.bf16.msrb.mxu3 %v3529_v51  ;;  %v3571_v51 = vld [vmem:[#allocation3 + $0x358] sm:$0xff] }
 0x58c   :  { %2463 = vmatpush.bf16.msrb.mxu2 %v3520_v54  ;;  %v961_v54 = vld [vmem:[#allocation2 + $0x108] sm:$0x11] }
 0x58d   :  { %2506 = vmatpush.bf16.msra.mxu1 %v3543_v63  ;;  %v970_v57 = vunpack.c.l.bf16 %v961_v54 }
 0x58e   :  { %2966 = vmatmul.msk.bf16.vlgmr.msrb.gmra.mxu1 %vm398_vm0, %v4577_v49 }
 0x58f   :  { %2477 = vmatpush.bf16.msrb.mxu3 %v3528_v56  ;;  %v984_v56 = vperm.slane %v968_v52, 0 }
 0x590   :  { %2464 = vmatpush.bf16.msrb.mxu2 %v3519_v58  ;;  %v969_v58 = vunpack.c.h.bf16 %v960_v50 }
 0x591   :  { %2507 = vmatpush.bf16.msra.mxu1 %v3542_v3 }
 0x593   :  { %2478 = vmatpush.bf16.msrb.mxu3 %v3527_v59  ;;  %2961 = vmatmul.msk.bf16.vlgmr.msrb.gmra.mxu0 %vm398_vm0, %v4577_v49 }
 0x594   :  { %2963 = vmatmul.msk.bf16.vlgmr.msra.gmra.mxu2 %vm398_vm0, %v4577_v49  ;;  %2489 = vmatpush.bf16.msrb.mxu0 %v3538_v60 }
 0x595   :  { %2465 = vmatpush.bf16.msrb.mxu2 %v3518_v61  ;;  %2508 = vmatpush.bf16.msra.mxu1 %v3541_v10 }
 0x596   :  { %2964 = vmatmul.msk.bf16.vlgmr.msra.gmra.mxu3 %vm398_vm0, %v4577_v49 }
 0x597   :  { %2479 = vmatpush.bf16.msrb.mxu3 %v3526_v62  ;;  %v986_v62 = vperm.slane %v970_v57, 0 }
 0x598   :  { %2490 = vmatpush.bf16.msrb.mxu0 %v3537_v0 }
 0x599   :  { %2466 = vmatpush.bf16.msrb.mxu2 %v3517_v1  ;;  %2509 = vmatpush.bf16.msra.mxu1 %v3540_v17  ;;  %v985_v1 = vperm.slane %v969_v58, 0  ;;  %v3591_v58 = vld [vmem:[#allocation3 + $0x248] sm:$0xff] }
 0x59b   :  { %2480 = vmatpush.bf16.msrb.mxu3 %v3525_v2 }
 0x59c   :  { %2491 = vmatpush.bf16.msrb.mxu0 %v3536_v4 }
 0x59d   :  { %2467 = vmatpush.bf16.msrb.mxu2 %v3516_v7  ;;  %2510 = vmatpush.bf16.msra.mxu1 %v3539_v29  ;;  %v3586_v7 = vld [vmem:[#allocation3 + $0x178] sm:$0xff] }
 0x59f   :  { %2481 = vmatpush.bf16.msrb.mxu3 %v3524_v8 }
 0x5a0   :  { %2492 = vmatpush.bf16.msrb.mxu0 %v3535_v11 }
 0x5a1   :  { %2468 = vmatpush.bf16.msrb.mxu2 %v3515_v13  ;;  %2559 = vmatpush.bf16.msrb.mxu1 %v3578_v31 }
 0x5a3   :  { %2482 = vmatpush.bf16.msrb.mxu3 %v3523_v15  ;;  %2965 = vmatmul.msk.bf16.vlgmr.msra.gmra.mxu0 %vm398_vm0, %v4577_v49  ;;  %v3560_v49 = vld [vmem:[#allocation3 + $0x1e0] sm:$0xff] }
 0x5a4   :  { %2493 = vmatpush.bf16.msrb.mxu0 %v3534_v18 }
 0x5a5   :  { %2517 = vmatpush.bf16.msra.mxu2 %v3554_v14  ;;  %2560 = vmatpush.bf16.msrb.mxu1 %v3577_v35  ;;  %v971_v14 = vunpack.c.h.bf16 %v961_v54  ;;  %v3593_v35 = vld [vmem:[#allocation3 + $0x20] sm:$0xff] }
 0x5a7   :  { %2531 = vmatpush.bf16.msra.mxu3 %v3562_v16 }
 0x5a8   :  { %2494 = vmatpush.bf16.msrb.mxu0 %v3533_v21 }
 0x5a9   :  { %2518 = vmatpush.bf16.msra.mxu2 %v3553_v19  ;;  %2561 = vmatpush.bf16.msrb.mxu1 %v3576_v41  ;;  %v3585_v19 = vld [vmem:[#allocation3 + $0xe0] sm:$0xff] }
 0x5ab   :  { %2532 = vmatpush.bf16.msra.mxu3 %v3561_v20  ;;  %v962_v20 = vld [vmem:[#allocation2 + $0x110] sm:$0x11] }
 0x5ac   :  { %2495 = vmatpush.bf16.msrb.mxu0 %v3532_v23  ;;  %v973_v29 = vunpack.c.h.bf16 %v962_v20 }
 0x5ad   :  { %2519 = vmatpush.bf16.msra.mxu2 %v3552_v22  ;;  %2562 = vmatpush.bf16.msrb.mxu1 %v3575_v45 }
 0x5af   :  { %2533 = vmatpush.bf16.msra.mxu3 %v3560_v49 }
 0x5b0   :  { %2496 = vmatpush.bf16.msrb.mxu0 %v3531_v25  ;;  %v3594_v25 = vld [vmem:[#allocation3 + $0xe8] sm:$0xff] }
 0x5b1   :  { %2520 = vmatpush.bf16.msra.mxu2 %v3551_v24  ;;  %2563 = vmatpush.bf16.msrb.mxu1 %v3574_v46  ;;  %v987_v24 = vperm.slane %v971_v14, 0  ;;  %v3600_v46 = vld [vmem:[#allocation3 + $0x210] sm:$0xff] }
 0x5b3   :  { %2534 = vmatpush.bf16.msra.mxu3 %v3559_v32 }
 0x5b4   :  { %2545 = vmatpush.bf16.msra.mxu0 %v3570_v26  ;;  %v3602_v26 = vld [vmem:[#allocation3 + $0x1e8] sm:$0xff] }
 0x5b5   :  { %2521 = vmatpush.bf16.msra.mxu2 %v3550_v30  ;;  %2564 = vmatpush.bf16.msrb.mxu1 %v3573_v40  ;;  %v3584_v30 = vld [vmem:[#allocation3 + $0x300] sm:$0xff] }
 0x5b7   :  { %2535 = vmatpush.bf16.msra.mxu3 %v3558_v36  ;;  %v3601_v36 = vld [vmem:[#allocation3 + $0x3d8] sm:$0xff] }
 0x5b8   :  { %2546 = vmatpush.bf16.msra.mxu0 %v3569_v27 }
 0x5b9   :  { %2522 = vmatpush.bf16.msra.mxu2 %v3549_v34  ;;  %2565 = vmatpush.bf16.msrb.mxu1 %v3572_v47  ;;  %v3582_v47 = vld [vmem:[#allocation3 + $0x220] sm:$0xff] }
 0x5bb   :  { %2536 = vmatpush.bf16.msra.mxu3 %v3557_v42  ;;  %v3583_v42 = vld [vmem:[#allocation3 + $0x70] sm:$0xff] }
 0x5bc   :  { %2547 = vmatpush.bf16.msra.mxu0 %v3568_v28  ;;  %v972_v28 = vunpack.c.l.bf16 %v962_v20 }
 0x5bd   :  { %2523 = vmatpush.bf16.msra.mxu2 %v3548_v39  ;;  %2566 = vmatpush.bf16.msrb.mxu1 %v3571_v51  ;;  %v989_v39 = vperm.slane %v973_v29, 0  ;;  %v3610_v51 = vld [vmem:[#allocation3 + $0x2e8] sm:$0xff] }
 0x5bf   :  { %2537 = vmatpush.bf16.msra.mxu3 %v3556_v9 }
 0x5c0   :  { %2548 = vmatpush.bf16.msra.mxu0 %v3567_v33 }
 0x5c1   :  { %2524 = vmatpush.bf16.msra.mxu2 %v3547_v44 }
 0x5c3   :  { %2538 = vmatpush.bf16.msra.mxu3 %v3555_v48 }
 0x5c4   :  { %2549 = vmatpush.bf16.msra.mxu0 %v3566_v37  ;;  %v988_v37 = vperm.slane %v972_v28, 0 }
 0x5c8   :  { %2550 = vmatpush.bf16.msra.mxu0 %v3565_v55  ;;  %v963_v55 = vld [vmem:[#allocation2 + $0x118] sm:$0x11] }
 0x5c9   :  { %v975_v48 = vunpack.c.h.bf16 %v963_v55  ;;  %v974_v52 = vunpack.c.l.bf16 %v963_v55 }
 0x5cb   :  { %v991_v57 = vperm.slane %v975_v48, 0  ;;  %v3617_v48 = vld [vmem:[#allocation3 + $0x258] sm:$0xff] }
 0x5cc   :  { %2551 = vmatpush.bf16.msra.mxu0 %v3564_v5  ;;  %v3592_v5 = vld [vmem:[#allocation3 + $0x40] sm:$0xff] }
 0x5d0   :  { %2552 = vmatpush.bf16.msra.mxu0 %v3563_v43 }
 0x5e0   :  { %v1172_v53 = vpop.f32.mrf.mxu0 }
 0x5e1   :  { %v1173_v59 = vadd.f32 %v1172_v53, %v984_v56 }
 0x5e3   :  { %v1387_v2 = vmax.f32 %v1173_v59, 0.0  ;;  %v3599_v59 = vld [vmem:[#allocation3 + $0x2c8] sm:$0xff] }
 0x5e6   :  { %v1186_v60 = vpop.f32.mrf.mxu2 }
 0x5e7   :  { %v1187_v10 = vadd.f32 %v1186_v60, %v985_v1 }
 0x5e8   :  { %v1174_v63 = vpop.f32.mrf.mxu0 }
 0x5e9   :  { %v1200_v61 = vpop.f32.mrf.mxu3  ;;  %v1175_v0 = vadd.f32 %v1174_v63, %v984_v56  ;;  %v1388_v21 = vmax.f32 %v1187_v10, 0.0  ;;  %v3590_v10 = vld [vmem:[#allocation3 + $0x2b8] sm:$0xff] }
 0x5ea   :  { %v1201_v4 = vadd.f32 %v1200_v61, %v986_v62 }
 0x5eb   :  { %v1403_v3 = vmax.f32 %v1175_v0, 0.0  ;;  %v1270_v31 = vpop.f32.mrf.mxu1 }
 0x5ec   :  { %v1389_v15 = vmax.f32 %v1201_v4, 0.0  ;;  %v3609_v4 = vld [vmem:[#allocation3 + $0x198] sm:$0xff] }
 0x5ed   :  { %v1419_v8 = vpack.c.bf16 %v1403_v3, %v1387_v2  ;;  %v964_v2 = vld [vmem:[#allocation2 + $0x120] sm:$0x11]  ;;  %v990_v3 = vperm.slane %v974_v52, 0 }
 0x5ee   :  { %v1188_v11 = vpop.f32.mrf.mxu2  ;;  %v977_v14 = vunpack.c.h.bf16 %v964_v2 }
 0x5ef   :  { %2469 = vmatmul.bf16.vlgmr.msrb.gmra.mxu2 %v1419_v8  ;;  %v1189_v16 = vadd.f32 %v1188_v11, %v985_v1  ;;  %v3581_v1 = vld [vmem:[#allocation3 + $0x318] sm:$0xff]  ;;  %v3598_v11 = vld [vmem:[#allocation3 + $0x160] sm:$0xff] }
 0x5f0   :  { %2573 = vmatpush.bf16.msrb.mxu2 %v3586_v7  ;;  %v1214_v18 = vpop.f32.mrf.mxu0 }
 0x5f1   :  { %v1202_v13 = vpop.f32.mrf.mxu3  ;;  %v1404_v22 = vmax.f32 %v1189_v16, 0.0  ;;  %v1215_v32 = vadd.f32 %v1214_v18, %v987_v24  ;;  %v3580_v18 = vld [vmem:[#allocation3 + $0x200] sm:$0xff] }
 0x5f2   :  { %v1203_v17 = vadd.f32 %v1202_v13, %v986_v62  ;;  %v976_v13 = vunpack.c.l.bf16 %v964_v2 }
 0x5f3   :  { %v1420_v27 = vpack.c.bf16 %v1404_v22, %v1388_v21  ;;  %v1390_v45 = vmax.f32 %v1215_v32, 0.0  ;;  %v1272_v53 = vpop.f32.mrf.mxu1  ;;  %v3608_v21 = vld [vmem:[#allocation3 + $0x120] sm:$0xff] }
 0x5f4   :  { %v1405_v23 = vmax.f32 %v1203_v17, 0.0  ;;  %2574 = vmatpush.bf16.msrb.mxu2 %v3585_v19  ;;  %v1271_v17 = vadd.f32 %v1270_v31, %v991_v57  ;;  %v1273_v19 = vadd.f32 %v1272_v53, %v991_v57  ;;  %v3626_v57 = vld [vmem:[#allocation3 + $0x38] sm:$0xff] }
 0x5f5   :  { %2483 = vmatmul.bf16.vlgmr.msrb.gmra.mxu3 %v1420_v27  ;;  %v992_v27 = vperm.slane %v976_v13, 0 }
 0x5f6   :  { %v1421_v49 = vpack.c.bf16 %v1405_v23, %v1389_v15  ;;  %2587 = vmatpush.bf16.msrb.mxu3 %v3594_v25  ;;  %v1228_v33 = vpop.f32.mrf.mxu2  ;;  %v3597_v25 = vld [vmem:[#allocation3 + $0x3c8] sm:$0xff]  ;;  %v1410_v29 = vmax.f32 %v1273_v19, 0.0  ;;  %v3632_v19 = vld [vmem:[#allocation3 + $0x360] sm:$0xff] }
 0x5f7   :  { %v1229_v43 = vadd.f32 %v1228_v33, %v988_v37 }
 0x5f8   :  { %2497 = vmatmul.bf16.vlgmr.msrb.gmra.mxu0 %v1421_v49  ;;  %2575 = vmatpush.bf16.msrb.mxu2 %v3584_v30  ;;  %v1216_v41 = vpop.f32.mrf.mxu0  ;;  %v993_v49 = vperm.slane %v977_v14, 0  ;;  %v3579_v30 = vld [vmem:[#allocation3 + $0x130] sm:$0xff]  ;;  %v3615_v14 = vld [vmem:[#allocation3 + $0x1a0] sm:$0xff] }
 0x5f9   :  { %2601 = vmatpush.bf16.msrb.mxu0 %v3602_v26  ;;  %v1242_v34 = vpop.f32.mrf.mxu3  ;;  %v1217_v44 = vadd.f32 %v1216_v41, %v987_v24  ;;  %v1391_v60 = vmax.f32 %v1229_v43, 0.0  ;;  %v3589_v24 = vld [vmem:[#allocation3 + $0x3b8] sm:$0xff]  ;;  %v1394_v26 = vmax.f32 %v1271_v17, 0.0  ;;  %v3596_v41 = vld [vmem:[#allocation3 + $0x3a8] sm:$0xff]  ;;  %v966_v17 = vld [vmem:[#allocation2 + $0x130] sm:$0x11] }
 0x5fa   :  { %2588 = vmatpush.bf16.msrb.mxu3 %v3593_v35  ;;  %v1243_v40 = vadd.f32 %v1242_v34, %v989_v39  ;;  %v3607_v34 = vld [vmem:[#allocation3 + $0x58] sm:$0xff] }
 0x5fb   :  { %v1406_v9 = vmax.f32 %v1217_v44, 0.0  ;;  %v1326_v31 = vpop.f32.mrf.mxu1  ;;  %v3618_v35 = vld [vmem:[#allocation3 + $0x2d8] sm:$0xff]  ;;  %v1426_v44 = vpack.c.bf16 %v1410_v29, %v1394_v26  ;;  %v3642_v26 = vld [vmem:[#allocation3 + $0x190] sm:$0xff] }
 0x5fc   :  { %2576 = vmatpush.bf16.msrb.mxu2 %v3583_v42  ;;  %v1392_v61 = vmax.f32 %v1243_v40, 0.0  ;;  %v3623_v29 = vld [vmem:[#allocation3 + $0x250] sm:$0xff] }
 0x5fd   :  { %2602 = vmatpush.bf16.msrb.mxu0 %v3601_v36  ;;  %v1422_v50 = vpack.c.bf16 %v1406_v9, %v1390_v45  ;;  %v965_v36 = vld [vmem:[#allocation2 + $0x128] sm:$0x11]  ;;  %v3606_v9 = vld [vmem:[#allocation3 + $0x1d0] sm:$0xff] }
 0x5fe   :  { %2589 = vmatpush.bf16.msrb.mxu3 %v3592_v5  ;;  %v1230_v54 = vpop.f32.mrf.mxu2  ;;  %v978_v5 = vunpack.c.l.bf16 %v965_v36 }
 0x5ff   :  { %v1231_v62 = vadd.f32 %v1230_v54, %v988_v37  ;;  %2511 = vmatmul.bf16.vlgmr.msra.gmra.mxu1 %v1422_v50  ;;  %v3595_v50 = vld [vmem:[#allocation3 + $0x288] sm:$0xff] }
 0x600   :  { %2577 = vmatpush.bf16.msrb.mxu2 %v3582_v47  ;;  %v1256_v0 = vpop.f32.mrf.mxu0  ;;  %2615 = vmatpush.bf16.msra.mxu1 %v3610_v51  ;;  %v3587_v47 = vld [vmem:[#allocation3 + $0x328] sm:$0xff] }
 0x601   :  { %2603 = vmatpush.bf16.msrb.mxu0 %v3600_v46  ;;  %v1244_v56 = vpop.f32.mrf.mxu3  ;;  %v1407_v7 = vmax.f32 %v1231_v62, 0.0  ;;  %v1257_v20 = vadd.f32 %v1256_v0, %v990_v3  ;;  %v979_v46 = vunpack.c.h.bf16 %v965_v36  ;;  %v3616_v62 = vld [vmem:[#allocation3 + $0xa8] sm:$0xff] }
 0x602   :  { %v1245_v63 = vadd.f32 %v1244_v56, %v989_v39  ;;  %2590 = vmatpush.bf16.msrb.mxu3 %v3591_v58  ;;  %v3588_v39 = vld [vmem:[#allocation3 + $0x260] sm:$0xff]  ;;  %v3634_v58 = vld [vmem:[#allocation3 + $0x348] sm:$0xff] }
 0x603   :  { %v1423_v15 = vpack.c.bf16 %v1407_v7, %v1391_v60  ;;  %v1393_v32 = vmax.f32 %v1257_v20, 0.0  ;;  %v995_v60 = vperm.slane %v979_v46, 0  ;;  %v3633_v7 = vld [vmem:[#allocation3 + $0x228] sm:$0xff] }
 0x604   :  { %v1408_v8 = vmax.f32 %v1245_v63, 0.0  ;;  %2578 = vmatpush.bf16.msrb.mxu2 %v3581_v1  ;;  %2616 = vmatpush.bf16.msra.mxu1 %v3609_v4  ;;  %v1328_v1 = vpop.f32.mrf.mxu1  ;;  %v3625_v4 = vld [vmem:[#allocation3 + $0xb8] sm:$0xff] }
 0x605   :  { %2604 = vmatpush.bf16.msrb.mxu0 %v3599_v59  ;;  %2525 = vmatmul.bf16.vlgmr.msra.gmra.mxu2 %v1423_v15  ;;  %v994_v59 = vperm.slane %v978_v5, 0  ;;  %v1329_v13 = vadd.f32 %v1328_v1, %v995_v60 }
 0x606   :  { %v1424_v16 = vpack.c.bf16 %v1408_v8, %v1392_v61  ;;  %2591 = vmatpush.bf16.msrb.mxu3 %v3590_v10  ;;  %v1284_v22 = vpop.f32.mrf.mxu2  ;;  %v3605_v61 = vld [vmem:[#allocation3 + $0x2d0] sm:$0xff]  ;;  %v1327_v10 = vadd.f32 %v1326_v31, %v995_v60  ;;  %v4611_v31 = vld [vmem:[#allocation2 + $0x138] sm:$0x11]  ;;  %v3628_v60 = vld [vmem:[#allocation3 + $0x308] sm:$0xff] }
 0x607   :  { %v1285_v42 = vadd.f32 %v1284_v22, %v992_v27 }
 0x608   :  { %2539 = vmatmul.bf16.vlgmr.msra.gmra.mxu3 %v1424_v16  ;;  %2579 = vmatpush.bf16.msrb.mxu2 %v3580_v18  ;;  %v1258_v28 = vpop.f32.mrf.mxu0  ;;  %v3624_v18 = vld [vmem:[#allocation3 + $0x378] sm:$0xff] }
 0x609   :  { %2605 = vmatpush.bf16.msrb.mxu0 %v3598_v11  ;;  %v1298_v23 = vpop.f32.mrf.mxu3  ;;  %2617 = vmatpush.bf16.msra.mxu1 %v3608_v21  ;;  %v1259_v33 = vadd.f32 %v1258_v28, %v990_v3  ;;  %v1395_v51 = vmax.f32 %v1285_v42, 0.0  ;;  %v3604_v11 = vld [vmem:[#allocation3 + $0x1c8] sm:$0xff]  ;;  %v1398_v21 = vmax.f32 %v1327_v10, 0.0  ;;  %v3622_v42 = vld [vmem:[#allocation3 + $0x3d0] sm:$0xff] }
 0x60a   :  { %2592 = vmatpush.bf16.msrb.mxu3 %v3589_v24  ;;  %v1299_v55 = vadd.f32 %v1298_v23, %v993_v49  ;;  %v1414_v23 = vmax.f32 %v1329_v13, 0.0  ;;  %v3603_v24 = vld [vmem:[#allocation3 + $0x1b0] sm:$0xff]  ;;  %v3637_v13 = vld [vmem:[#allocation3 + $0x68] sm:$0xff] }
 0x60b   :  { %v1409_v37 = vmax.f32 %v1259_v33, 0.0 }
 0x60c   :  { %2580 = vmatpush.bf16.msrb.mxu2 %v3579_v30  ;;  %v1396_v52 = vmax.f32 %v1299_v55, 0.0  ;;  %v3631_v30 = vld [vmem:[#allocation3 + $0x278] sm:$0xff]  ;;  %v1430_v33 = vpack.c.bf16 %v1414_v23, %v1398_v21  ;;  %v3630_v55 = vld [vmem:[#allocation3 + $0xc8] sm:$0xff] }
 0x60d   :  { %2606 = vmatpush.bf16.msrb.mxu0 %v3597_v25  ;;  %v1425_v45 = vpack.c.bf16 %v1409_v37, %v1393_v32  ;;  %2618 = vmatpush.bf16.msra.mxu1 %v3607_v34  ;;  %v3614_v25 = vld [vmem:[#allocation3 + $0x390] sm:$0xff]  ;;  %v3613_v34 = vld [vmem:[#allocation3 + $0x398] sm:$0xff]  ;;  %v982_v37 = vunpack.c.l.bf16 %v4611_v31  ;;  %v3635_v21 = vld [vmem:[#allocation3 + $0x148] sm:$0xff] }
 0x60e   :  { %2593 = vmatpush.bf16.msrb.mxu3 %v3588_v39  ;;  %v1286_v43 = vpop.f32.mrf.mxu2 }
 0x60f   :  { %v1287_v53 = vadd.f32 %v1286_v43, %v992_v27  ;;  %2553 = vmatmul.bf16.vlgmr.msra.gmra.mxu0 %v1425_v45  ;;  %2567 = vmatmul.bf16.vlgmr.msrb.gmra.mxu1 %v1426_v44  ;;  %v981_v44 = vunpack.c.h.bf16 %v966_v17  ;;  %v3612_v45 = vld [vmem:[#allocation3 + $0x238] sm:$0xff]  ;;  %v3621_v43 = vld [vmem:[#allocation3 + $0x170] sm:$0xff] }
 0x610   :  { %2629 = vmatpush.bf16.msra.mxu2 %v3618_v35  ;;  %v1312_v56 = vpop.f32.mrf.mxu0  ;;  %v3641_v35 = vld [vmem:[#allocation3 + $0x310] sm:$0xff] }
 0x611   :  { %2607 = vmatpush.bf16.msrb.mxu0 %v3596_v41  ;;  %v1300_v40 = vpop.f32.mrf.mxu3  ;;  %2619 = vmatpush.bf16.msra.mxu1 %v3606_v9  ;;  %v1411_v63 = vmax.f32 %v1287_v53, 0.0  ;;  %v1313_v8 = vadd.f32 %v1312_v56, %v994_v59  ;;  %v3640_v9 = vld [vmem:[#allocation3 + $0x270] sm:$0xff]  ;;  %v3639_v53 = vld [vmem:[#allocation3 + $0x298] sm:$0xff] }
 0x612   :  { %v1301_v54 = vadd.f32 %v1300_v40, %v993_v49  ;;  %2594 = vmatpush.bf16.msrb.mxu3 %v3587_v47  ;;  %v980_v49 = vunpack.c.l.bf16 %v966_v17  ;;  %v3629_v40 = vld [vmem:[#allocation3 + $0x370] sm:$0xff]  ;;  %v997_v47 = vperm.slane %v981_v44, 0 }
 0x613   :  { %v1427_v2 = vpack.c.bf16 %v1411_v63, %v1395_v51  ;;  %v1397_v20 = vmax.f32 %v1313_v8, 0.0  ;;  %v1382_v51 = vpop.f32.mrf.mxu1  ;;  %v3627_v8 = vld [vmem:[#allocation3 + $0x78] sm:$0xff] }
 0x614   :  { %2630 = vmatpush.bf16.msra.mxu2 %v3617_v48  ;;  %v1412_v0 = vmax.f32 %v1301_v54, 0.0  ;;  %v996_v36 = vperm.slane %v980_v49, 0  ;;  %v998_v48 = vperm.slane %v982_v37, 0 }
 0x615   :  { %2608 = vmatpush.bf16.msrb.mxu0 %v3595_v50  ;;  %2620 = vmatpush.bf16.msra.mxu1 %v3605_v61 }
 0x616   :  { %v1428_v3 = vpack.c.bf16 %v1412_v0, %v1396_v52  ;;  %2643 = vmatpush.bf16.msra.mxu3 %v3626_v57  ;;  %2581 = vmatmul.bf16.vlgmr.msrb.gmra.mxu2 %v1427_v2  ;;  %v3611_v52 = vld [vmem:[#allocation3 + $0x1f8] sm:$0xff]  ;;  %v3638_v0 = vld [vmem:[#allocation3] sm:$0xff] }
 0x617   :  { %v1340_v15 = vpop.f32.mrf.mxu2 }
 0x618   :  { %2631 = vmatpush.bf16.msra.mxu2 %v3616_v62  ;;  %2595 = vmatmul.bf16.vlgmr.msrb.gmra.mxu3 %v1428_v3  ;;  %v1314_v16 = vpop.f32.mrf.mxu0  ;;  %v1341_v5 = vadd.f32 %v1340_v15, %v996_v36  ;;  %v983_v3 = vunpack.c.h.bf16 %v4611_v31  ;;  %v3705_v31 = vld [vmem:[%s4658_s1 + $0x13] ss:$0 sm:$0xff] }
 0x619   :  { %2657 = vmatpush.bf16.msra.mxu0 %v3634_v58  ;;  %2621 = vmatpush.bf16.msra.mxu1 %v3604_v11  ;;  %v1315_v22 = vadd.f32 %v1314_v16, %v994_v59  ;;  %v1354_v28 = vpop.f32.mrf.mxu3  ;;  %v3620_v59 = vld [vmem:[#allocation3 + $0x180] sm:$0xff] }
 0x61a   :  { %2644 = vmatpush.bf16.msra.mxu3 %v3625_v4  ;;  %v1399_v54 = vmax.f32 %v1341_v5, 0.0  ;;  %v1355_v61 = vadd.f32 %v1354_v28, %v997_v47 }
 0x61b   :  { %v1413_v27 = vmax.f32 %v1315_v22, 0.0  ;;  %v1384_v16 = vpop.f32.mrf.mxu1 }
 0x61c   :  { %2632 = vmatpush.bf16.msra.mxu2 %v3615_v14  ;;  %v1400_v10 = vmax.f32 %v1355_v61, 0.0  ;;  %v999_v14 = vperm.slane %v983_v3, 0 }
 0x61d   :  { %2658 = vmatpush.bf16.msra.mxu0 %v3633_v7  ;;  %v1429_v32 = vpack.c.bf16 %v1413_v27, %v1397_v20  ;;  %2622 = vmatpush.bf16.msra.mxu1 %v3603_v24  ;;  %v3619_v7 = vld [vmem:[#allocation3 + $0xf0] sm:$0xff] }
 0x61e   :  { %2645 = vmatpush.bf16.msra.mxu3 %v3624_v18  ;;  %v3636_v18 = vld [vmem:[#allocation3 + $0xf8] sm:$0xff]  ;;  %v1385_v20 = vadd.f32 %v1384_v16, %v999_v14 }
 0x61f   :  { %v1342_v39 = vpop.f32.mrf.mxu2  ;;  %2609 = vmatmul.bf16.vlgmr.msrb.gmra.mxu0 %v1429_v32 }
 0x620   :  { %2633 = vmatpush.bf16.msra.mxu2 %v3614_v25  ;;  %v1368_v41 = vpop.f32.mrf.mxu0  ;;  %2623 = vmatmul.bf16.vlgmr.msra.gmra.mxu1 %v1430_v33  ;;  %v1343_v46 = vadd.f32 %v1342_v39, %v996_v36  ;;  %v1418_v23 = vmax.f32 %v1385_v20, 0.0 }
 0x621   :  { %2659 = vmatpush.bf16.msra.mxu0 %v3632_v19  ;;  %2671 = vmatpush.bf16.msrb.mxu1 %v3642_v26  ;;  %v1356_v50 = vpop.f32.mrf.mxu3  ;;  %v1369_v57 = vadd.f32 %v1368_v41, %v998_v48  ;;  %v1383_v19 = vadd.f32 %v1382_v51, %v999_v14 }
 0x622   :  { %2646 = vmatpush.bf16.msra.mxu3 %v3623_v29  ;;  %v1415_v56 = vmax.f32 %v1343_v46, 0.0  ;;  %v1357_v62 = vadd.f32 %v1356_v50, %v997_v47 }
 0x623   :  { %v1401_v2 = vmax.f32 %v1369_v57, 0.0  ;;  %v1402_v22 = vmax.f32 %v1383_v19, 0.0 }
 0x624   :  { %2634 = vmatpush.bf16.msra.mxu2 %v3613_v34  ;;  %v1431_v1 = vpack.c.bf16 %v1415_v56, %v1399_v54  ;;  %v1416_v11 = vmax.f32 %v1357_v62, 0.0 }
 0x625   :  { %2660 = vmatpush.bf16.msra.mxu0 %v3631_v30  ;;  %2672 = vmatpush.bf16.msrb.mxu1 %v3641_v35  ;;  %v1434_v24 = vpack.c.bf16 %v1418_v23, %v1402_v22 }
 0x626   :  { %2647 = vmatpush.bf16.msra.mxu3 %v3622_v42  ;;  %v1432_v17 = vpack.c.bf16 %v1416_v11, %v1400_v10 }
 0x628   :  { %2635 = vmatpush.bf16.msra.mxu2 %v3612_v45  ;;  %v1370_v58 = vpop.f32.mrf.mxu0 }
 0x629   :  { %2661 = vmatpush.bf16.msra.mxu0 %v3630_v55  ;;  %2673 = vmatpush.bf16.msrb.mxu1 %v3640_v9  ;;  %v1371_v63 = vadd.f32 %v1370_v58, %v998_v48 }
 0x62a   :  { %2648 = vmatpush.bf16.msra.mxu3 %v3621_v43 }
 0x62b   :  { %v1417_v4 = vmax.f32 %v1371_v63, 0.0 }
 0x62c   :  { %2636 = vmatpush.bf16.msra.mxu2 %v3611_v52 }
 0x62d   :  { %2662 = vmatpush.bf16.msra.mxu0 %v3629_v40  ;;  %2674 = vmatpush.bf16.msrb.mxu1 %v3639_v53  ;;  %v1433_v15 = vpack.c.bf16 %v1417_v4, %v1401_v2 }
 0x62e   :  { %2649 = vmatpush.bf16.msra.mxu3 %v3620_v59 }
 0x62f   :  { %2637 = vmatmul.bf16.vlgmr.msra.gmra.mxu2 %v1431_v1 }
 0x631   :  { %2663 = vmatpush.bf16.msra.mxu0 %v3628_v60  ;;  %2675 = vmatpush.bf16.msrb.mxu1 %v3638_v0 }
 0x632   :  { %2650 = vmatpush.bf16.msra.mxu3 %v3619_v7 }
 0x635   :  { %2664 = vmatpush.bf16.msra.mxu0 %v3627_v8  ;;  %2676 = vmatpush.bf16.msrb.mxu1 %v3637_v13 }
 0x636   :  { %2651 = vmatmul.bf16.vlgmr.msra.gmra.mxu3 %v1432_v17 }
 0x638   :  { %2665 = vmatmul.bf16.vlgmr.msra.gmra.mxu0 %v1433_v15 }
 0x639   :  { %2677 = vmatpush.bf16.msrb.mxu1 %v3636_v18 }
 0x63d   :  { %2678 = vmatpush.bf16.msrb.mxu1 %v3635_v21 }
 0x640   :  { %2679 = vmatmul.bf16.vlgmr.msrb.gmra.mxu1 %v1434_v24 }
 0x672   :  { %v2470_v25 = vpop.f32.mrf.mxu2 }
 0x673   :  { %v2471_v34 = vadd.f32 %v3705_v31, %v2470_v25 }
 0x675   :  { %v2498_v27 = vpop.f32.mrf.mxu0 }
 0x678   :  { %v2484_v26 = vpop.f32.mrf.mxu3 }
 0x679   :  { %v2485_v35 = vadd.f32 %v2484_v26, %v2471_v34 }
 0x67a   :  { %v2472_v28 = vpop.f32.mrf.mxu2 }
 0x67b   :  { %v2499_v39 = vadd.f32 %v2498_v27, %v2485_v35  ;;  %v2473_v55 = vadd.f32 %v3705_v31, %v2472_v28 }
 0x67c   :  { %v2512_v49 = vpop.f32.mrf.mxu1 }
 0x67d   :  { %v2500_v30 = vpop.f32.mrf.mxu0  ;;  %v2513_v44 = vadd.f32 %v2512_v49, %v2499_v39 }
 0x680   :  { %v2486_v29 = vpop.f32.mrf.mxu3 }
 0x681   :  { %v2487_v45 = vadd.f32 %v2486_v29, %v2473_v55  ;;  %v2741_v55 = vld [vmem:[%s4659_s2 + $0x20] sm:$0xff] }
 0x683   :  { %v2501_v48 = vadd.f32 %v2500_v30, %v2487_v45  ;;  %v2739_v45 = vld [vmem:[%s4659_s2 + $0x10] sm:$0xff] }
 0x684   :  { %v2514_v32 = vpop.f32.mrf.mxu1 }
 0x685   :  { %v2515_v50 = vadd.f32 %v2514_v32, %v2501_v48 }
 0x688   :  { %v2526_v33 = vpop.f32.mrf.mxu2 }
 0x689   :  { %v2527_v9 = vadd.f32 %v2526_v33, %v2513_v44  ;;  %v2740_v44 = vld [vmem:[%s4659_s2 + $0x18] sm:$0xff] }
 0x68b   :  { %v2540_v36 = vpop.f32.mrf.mxu3 }
 0x68c   :  { %v2554_v37 = vpop.f32.mrf.mxu0  ;;  %v2568_v41 = vpop.f32.mrf.mxu1  ;;  %v2541_v43 = vadd.f32 %v2540_v36, %v2527_v9 }
 0x68e   :  { %v2555_v51 = vadd.f32 %v2554_v37, %v2541_v43 }
 0x690   :  { %v2528_v42 = vpop.f32.mrf.mxu2  ;;  %v2569_v56 = vadd.f32 %v2568_v41, %v2555_v51 }
 0x691   :  { %v2529_v52 = vadd.f32 %v2528_v42, %v2515_v50 }
 0x693   :  { %v2542_v5 = vpop.f32.mrf.mxu3 }
 0x694   :  { %v2556_v46 = vpop.f32.mrf.mxu0  ;;  %v2570_v40 = vpop.f32.mrf.mxu1  ;;  %v2543_v57 = vadd.f32 %v2542_v5, %v2529_v52 }
 0x696   :  { %v2557_v61 = vadd.f32 %v2556_v46, %v2543_v57 }
 0x698   :  { %v2571_v63 = vadd.f32 %v2570_v40, %v2557_v61  ;;  %v3707_v61 = vld [vmem:[%s4658_s1 + $0x15] ss:$0 sm:$0xff] }
 0x699   :  { %v2582_v47 = vpop.f32.mrf.mxu2 }
 0x69a   :  { %v2583_v58 = vadd.f32 %v2582_v47, %v2569_v56 }
 0x69b   :  { %v2596_v53 = vpop.f32.mrf.mxu3 }
 0x69c   :  { %v2610_v54 = vpop.f32.mrf.mxu0  ;;  %v2597_v62 = vadd.f32 %v2596_v53, %v2583_v58  ;;  %v3706_v58 = vld [vmem:[%s4658_s1 + $0x14] ss:$0 sm:$0xff] }
 0x69d   :  { %v2624_v59 = vpop.f32.mrf.mxu1 }
 0x69e   :  { %v2611_v2 = vadd.f32 %v2610_v54, %v2597_v62 }
 0x6a0   :  { %v2625_v8 = vadd.f32 %v2624_v59, %v2611_v2 }
 0x6a1   :  { %v2584_v60 = vpop.f32.mrf.mxu2 }
 0x6a2   :  { %v2585_v3 = vadd.f32 %v2584_v60, %v2571_v63 }
 0x6a3   :  { %v2598_v0 = vpop.f32.mrf.mxu3 }
 0x6a4   :  { %v2612_v1 = vpop.f32.mrf.mxu0  ;;  %v2599_v10 = vadd.f32 %v2598_v0, %v2585_v3 }
 0x6a5   :  { %v2626_v7 = vpop.f32.mrf.mxu1 }
 0x6a6   :  { %v2613_v15 = vadd.f32 %v2612_v1, %v2599_v10  ;;  %v3708_v10 = vld [vmem:[%s4659_s2 + $0x30] ss:$0 sm:$0xff] }
 0x6a8   :  { %v2627_v20 = vadd.f32 %v2626_v7, %v2613_v15 }
 0x6b2   :  { %v2638_v4 = vpop.f32.mrf.mxu2 }
 0x6b3   :  { %v2639_v11 = vadd.f32 %v2638_v4, %v2625_v8 }
 0x6b5   :  { %v2666_v13 = vpop.f32.mrf.mxu0 }
 0x6b9   :  { %v2652_v14 = vpop.f32.mrf.mxu3 }
 0x6ba   :  { %v2653_v16 = vadd.f32 %v2652_v14, %v2639_v11  ;;  %v2640_v18 = vpop.f32.mrf.mxu2 }
 0x6bb   :  { %v2641_v22 = vadd.f32 %v2640_v18, %v2627_v20 }
 0x6bc   :  { %v2667_v17 = vadd.f32 %v2666_v13, %v2653_v16 }
 0x6bd   :  { %v2680_v19 = vpop.f32.mrf.mxu1  ;;  %v2668_v27 = vpop.f32.mrf.mxu0 }
 0x6be   :  { %v2681_v21 = vadd.f32 %v2680_v19, %v2667_v17 }
 0x6c0   :  { %v2685_v23 = vadd.f32 %v2681_v21, %v4571_v6 }
 0x6c1   :  { %v2654_v24 = vpop.f32.mrf.mxu3 }
 0x6c2   :  { %v2655_v25 = vadd.f32 %v2654_v24, %v2641_v22  ;;  %v2689_v26 = vsel %vm398_vm0, %v2685_v23, 0.0 }
 0x6c3   :  { %2690 = vadd.xlane.f32.xlu0 %v2689_v26 }
 0x6c4   :  { %v2669_v49 = vadd.f32 %v2668_v27, %v2655_v25 }
 0x6c5   :  { %v2682_v28 = vpop.f32.mrf.mxu1 }
 0x6c6   :  { %v2683_v29 = vadd.f32 %v2682_v28, %v2669_v49 }
 0x6c8   :  { %v2686_v30 = vadd.f32 %v2683_v29, %v4573_v12  ;;  %v2742_v12 = vld [vmem:[%s4659_s2 + $0x28] sm:$0xff] }
 0x6c9   :  { %2763 = vmatpush.msrb.mxu2 %v2742_v12 }
 0x6ca   :  { %v2692_v31 = vsel %vm398_vm0, %v2686_v30, 0.0 }
 0x6cb   :  { %2693 = vadd.xlane.f32.xlu0 %v2692_v31  ;;  %2764 = vmatpush.msrb.mxu2 %v2741_v55 }
 0x6cd   :  { %2765 = vmatpush.msrb.mxu2 %v2740_v44 }
 0x6cf   :  { %2766 = vmatpush.msrb.mxu2 %v2739_v45 }
 0x736   :  { %v2691_v32 = vpop.xlane.xlu0 %2690 }
 0x737   :  { %v2695_v33 = vmul.f32 %v2691_v32, %v4557_v38 }
 0x739   :  { %v2697_v34 = vsub.f32 %v2685_v23, %v2695_v33 }
 0x73b   :  { %v2699_v35 = vmul.f32 %v2697_v34, %v2697_v34 }
 0x73d   :  { %v2701_v6 = vsel %vm398_vm0, %v2699_v35, 0.0 }
 0x73e   :  { %2702 = vadd.xlane.f32.xlu1 %v2701_v6  ;;  %v2694_v36 = vpop.xlane.xlu0 %2693 }
 0x73f   :  { %v2696_v37 = vmul.f32 %v2694_v36, %v4557_v38 }
 0x741   :  { %v2698_v39 = vsub.f32 %v2686_v30, %v2696_v37 }
 0x743   :  { %v2700_v41 = vmul.f32 %v2698_v39, %v2698_v39 }
 0x745   :  { %v2704_v42 = vsel %vm398_vm0, %v2700_v41, 0.0 }
 0x746   :  { %2705 = vadd.xlane.f32.xlu1 %v2704_v42 }
 0x7b1   :  { %v2703_v9 = vpop.xlane.xlu1 %2702 }
 0x7b2   :  { %v2707_v5 = vmul.f32 %v2703_v9, %v4557_v38 }
 0x7b4   :  { %v2709_v46 = vadd.f32 1e-05, %v2707_v5 }
 0x7b6   :  { %3709 = vrsqrt.f32 %v2709_v46  ;;  %vm2717_vm9 = vweird.f32 %v2709_v46 }
 0x7b9   :  { %v2706_v48 = vpop.xlane.xlu1 %2705 }
 0x7ba   :  { %v2708_v43 = vmul.f32 %v2706_v48, %v4557_v38 }
 0x7bc   :  { %v3710_v40 = vpop.eup %3709  ;;  %v2710_v47 = vadd.f32 1e-05, %v2708_v43 }
 0x7bd   :  { %v2712_v50 = vmul.f32 %v3710_v40, %v2709_v46  ;;  %vm2718_vm8 = vweird.f32 %v3710_v40 }
 0x7be   :  { %3711 = vrsqrt.f32 %v2710_v47  ;;  %vm2719_vm10 = vmor %vm2717_vm9, %vm2718_vm8  ;;  %vm2727_vm12 = vweird.f32 %v2710_v47 }
 0x7bf   :  { %v2713_v51 = vmul.f32 %v3710_v40, %v2712_v50 }
 0x7c1   :  { %v2714_v52 = vmul.f32 0.5, %v2713_v51 }
 0x7c3   :  { %v2715_v53 = vsub.f32 1.5, %v2714_v52 }
 0x7c4   :  { %v3712_v54 = vpop.eup %3711 }
 0x7c5   :  { %v2716_v56 = vmul.f32 %v3710_v40, %v2715_v53  ;;  %v2722_v57 = vmul.f32 %v3712_v54, %v2710_v47  ;;  %vm2728_vm11 = vweird.f32 %v3712_v54 }
 0x7c6   :  { %vm2729_vm13 = vmor %vm2727_vm12, %vm2728_vm11 }
 0x7c7   :  { %v2720_v59 = vsel %vm2719_vm10, %v3710_v40, %v2716_v56  ;;  %v2723_v60 = vmul.f32 %v3712_v54, %v2722_v57 }
 0x7c8   :  { %v2731_v38 = vmul.f32 %v2720_v59, %v2697_v34 }
 0x7c9   :  { %v2724_v62 = vmul.f32 0.5, %v2723_v60 }
 0x7ca   :  { %v2734_v63 = vmul.f32 %v3706_v58, %v2731_v38 }
 0x7cb   :  { %v2725_v0 = vsub.f32 1.5, %v2724_v62 }
 0x7cc   :  { %v2737_v1 = vadd.f32 %v3707_v61, %v2734_v63 }
 0x7cd   :  { %v2726_v2 = vmul.f32 %v3712_v54, %v2725_v0 }
 0x7ce   :  { %3479 = vmatmul.msk.f32.vlgmr.msrb.gmra.mxu2 %vm398_vm0, %v2737_v1 }
 0x7cf   :  { %v2730_v3 = vsel %vm2729_vm13, %v3712_v54, %v2726_v2 }
 0x7d0   :  { %v2732_v4 = vmul.f32 %v2730_v3, %v2698_v39 }
 0x7d2   :  { %v2735_v7 = vmul.f32 %v3706_v58, %v2732_v4 }
 0x7d4   :  { %v2738_v8 = vadd.f32 %v3707_v61, %v2735_v7 }
 0x7d6   :  { %3480 = vmatmul.msk.f32.gmra.mxu2 %vm398_vm0, %v2738_v8 }
 0x851   :  { %v2768_v11 = vpop.f32.mrf.mxu2 }
 0x852   :  { %v2769_v13 = vadd.f32 %v3708_v10, %v2768_v11 }
 0x854   :  { %2774 = vst [vmem:[%s4662_s5] sm:$0xff] %v2769_v13 }
 0x859   :  { %v2771_v14 = vpop.f32.mrf.mxu2 }
 0x85a   :  { %v2772_v15 = vadd.f32 %v3708_v10, %v2771_v14 }
 0x85c   :  { %2775 = vst [vmem:[%s4662_s5 + $0x8] sm:$0xff] %v2772_v15 }
 0x85d   :  { %2780 = vsyncmov [#allocation4] }
 0x860   :  { %s2781_s25 = vpop.sfrf %2780 }
 0x861   :  { %p3481_p0 = scmp.ne.s32.totalorder %s2781_s25, 0 }
 0x863   :  { %2785 = shalt.err (%p3481_p0)  }
 0x864   :  { %2787 = vsyncmov [#allocation4 + $0x1] }
 0x867   :  { %s2788_s26 = vpop.sfrf %2787 }
 0x868   :  { %p3482_p1 = scmp.ne.s32.totalorder %s2788_s26, 0 }
 0x86a   :  { %2792 = shalt.err (%p3482_p1)  }

</bundles_post_ra>
